<compile_context>
chip_gen: v7x
topology: tpu7x:2x2x1
jax: 0.10.0
libtpu: 0.0.40
codegen_flags: <defaults>
</compile_context>

<pallas_src>
import functools

import jax
import jax.numpy as jnp
from jax.experimental import pallas as pl
from jax.experimental.pallas import tpu as pltpu


def lstm_reg_kernel(gx0_ref, whh0_ref, wih1_ref, whh1_ref, b1_ref,
                    hseq_ref,
                    h0_ref, c0_ref, h1_ref, c1_ref,
                    *, hidden_size, t_block):
    """One grid step == T_BLOCK timesteps. Recurrent state (h, c) for both LSTM
    layers lives in VMEM scratch and persists across grid iterations.

    gx0_ref holds the pre-computed layer-0 input projection x@Wih0^T + b0
    (hoisted out of the recurrence), so layer 0 only does h0 @ Whh0 here."""
    H = hidden_size

    @pl.when(pl.program_id(0) == 0)
    def _():
        h0_ref[...] = jnp.zeros_like(h0_ref)
        c0_ref[...] = jnp.zeros_like(c0_ref)
        h1_ref[...] = jnp.zeros_like(h1_ref)
        c1_ref[...] = jnp.zeros_like(c1_ref)

    # Resident weights: load once per grid step, reused by every timestep.
    whh0 = whh0_ref[...]
    wih1 = wih1_ref[...]
    whh1 = whh1_ref[...]
    b1 = b1_ref[...]

    def gate_math(gates, c):
        # PyTorch gate order [i, f, g, o].
        # NOTE: with H < 128 these lane slices share a vreg; for real H pad the
        # gate axis to 128-lane multiples so each slice is a whole-vreg view.
        i = jax.nn.sigmoid(gates[:, 0 * H:1 * H])
        f = jax.nn.sigmoid(gates[:, 1 * H:2 * H])
        g = jnp.tanh(gates[:, 2 * H:3 * H])
        o = jax.nn.sigmoid(gates[:, 3 * H:4 * H])
        c_new = f * c + i * g
        h_new = o * jnp.tanh(c_new)
        return h_new, c_new

    def step(t, carry):
        h0, c0, h1, c1 = carry
        # Layer 0: input projection already hoisted (gx0 includes b_ih0+b_hh0).
        gates0 = gx0_ref[t] + jnp.dot(h0, whh0,
                                      preferred_element_type=jnp.float32)
        h0, c0 = gate_math(gates0, c0)
        # Layer 1.
        gates1 = (jnp.dot(h0, wih1, preferred_element_type=jnp.float32)
                  + jnp.dot(h1, whh1, preferred_element_type=jnp.float32)
                  + b1)
        h1, c1 = gate_math(gates1, c1)
        # Lane-dense per-step output: the (B, H) hidden state (not the O=1 head).
        hseq_ref[t] = h1.astype(hseq_ref.dtype)
        return (h0, c0, h1, c1)

    carry = (h0_ref[...], c0_ref[...], h1_ref[...], c1_ref[...])
    carry = jax.lax.fori_loop(0, t_block, step, carry, unroll=True)
    h0_ref[...], c0_ref[...], h1_ref[...], c1_ref[...] = carry


def lstm_reg_forward(x, params, hidden_size, output_size, t_block=8):
    """x: (S, B, I) float32 -> (S, B, output_size) float32."""
    S, B, I = x.shape
    H = hidden_size
    O = output_size

    (wih0_t, whh0_t, b0, wih1_t, whh1_t, b1, wreg_t, breg) = params

    # Pad batch to a sublane multiple (8) and seq to a multiple of t_block.
    B_pad = max(8, ((B + 7) // 8) * 8)
    t_block = min(t_block, S)
    n_blocks = int(pl.cdiv(S, t_block))
    S_pad = n_blocks * t_block

    x_pad = jnp.zeros((S_pad, B_pad, I), x.dtype).at[:S, :B, :].set(x)

    # Hoisted, non-recurrent layer-0 input projection: one big MXU matmul.
    gx0 = (x_pad.reshape(S_pad * B_pad, I) @ wih0_t + b0)
    gx0 = gx0.reshape(S_pad, B_pad, 4 * H)

    kernel = functools.partial(lstm_reg_kernel, hidden_size=H, t_block=t_block)

    full = lambda shape: pl.BlockSpec(shape, lambda t: (0,) * len(shape))

    # Advisory cost estimate so XLA can overlap the hoisted matmuls with us.
    flops = n_blocks * t_block * (2 * B_pad * H * 4 * H * 3)
    transcendentals = S_pad * B_pad * 10 * H
    bytes_accessed = 4 * (S_pad * B_pad * 4 * H          # gx0 in
                          + 3 * H * 4 * H + 4 * H        # weights + bias
                          + S_pad * B_pad * H)           # hseq out

    hseq = pl.pallas_call(
        kernel,
        out_shape=jax.ShapeDtypeStruct((S_pad, B_pad, H), jnp.float32),
        grid_spec=pltpu.PrefetchScalarGridSpec(
            num_scalar_prefetch=0,
            grid=(n_blocks,),
            in_specs=[
                pl.BlockSpec((t_block, B_pad, 4 * H), lambda t: (t, 0, 0)),
                full((H, 4 * H)),   # W_hh layer0 (transposed)
                full((H, 4 * H)),   # W_ih layer1 (transposed)
                full((H, 4 * H)),   # W_hh layer1 (transposed)
                full((1, 4 * H)),   # b_ih + b_hh layer1
            ],
            out_specs=pl.BlockSpec((t_block, B_pad, H), lambda t: (t, 0, 0)),
            scratch_shapes=[
                pltpu.VMEM((B_pad, H), jnp.float32),   # h layer0
                pltpu.VMEM((B_pad, H), jnp.float32),   # c layer0
                pltpu.VMEM((B_pad, H), jnp.float32),   # h layer1
                pltpu.VMEM((B_pad, H), jnp.float32),   # c layer1
            ],
        ),
        compiler_params=pltpu.CompilerParams(
            dimension_semantics=("arbitrary",),        # time is a recurrence
            vmem_limit_bytes=32 * 1024 * 1024),
        cost_estimate=pl.CostEstimate(flops=flops,
                                      transcendentals=transcendentals,
                                      bytes_accessed=bytes_accessed),
    )(gx0, whh0_t, wih1_t, whh1_t, b1)

    # Slice off padding; regression head done once as a single matmul.
    hs = hseq[:S, :B, :]
    y = (hs.reshape(S * B, H) @ wreg_t + breg).reshape(S, B, O)
    return y


def init_params(key, input_size, hidden_size, output_size):
    """Deterministic init mimicking PyTorch shapes/uniform range."""
    H = hidden_size
    k = 1.0 / jnp.sqrt(jnp.float32(H))
    keys = jax.random.split(key, 10)
    u = lambda kk, shape: jax.random.uniform(kk, shape, jnp.float32, -k, k)

    # PyTorch shapes: weight_ih_l0 (4H, I), weight_hh_l0 (4H, H), biases (4H,)
    w_ih_l0 = u(keys[0], (4 * H, input_size))
    w_hh_l0 = u(keys[1], (4 * H, H))
    b_ih_l0 = u(keys[2], (4 * H,))
    b_hh_l0 = u(keys[3], (4 * H,))
    w_ih_l1 = u(keys[4], (4 * H, H))
    w_hh_l1 = u(keys[5], (4 * H, H))
    b_ih_l1 = u(keys[6], (4 * H,))
    b_hh_l1 = u(keys[7], (4 * H,))
    w_reg = u(keys[8], (output_size, H))
    b_reg = u(keys[9], (output_size,))

    params_kernel = (
        w_ih_l0.T, w_hh_l0.T, (b_ih_l0 + b_hh_l0)[None, :],
        w_ih_l1.T, w_hh_l1.T, (b_ih_l1 + b_hh_l1)[None, :],
        w_reg.T, b_reg[None, :],
    )
    params_torchlike = (w_ih_l0, w_hh_l0, b_ih_l0, b_hh_l0,
                        w_ih_l1, w_hh_l1, b_ih_l1, b_hh_l1,
                        w_reg, b_reg)
    return params_kernel, params_torchlike


def lstm_reg_reference(x, params_torchlike, hidden_size):
    """Pure-JAX reference matching PyTorch nn.LSTM(num_layers=2) + Linear."""
    (w_ih_l0, w_hh_l0, b_ih_l0, b_hh_l0,
     w_ih_l1, w_hh_l1, b_ih_l1, b_hh_l1, w_reg, b_reg) = params_torchlike
    H = hidden_size
    S, B, _ = x.shape

    def cell(x_t, h, c, w_ih, w_hh, b_ih, b_hh):
        gates = x_t @ w_ih.T + b_ih + h @ w_hh.T + b_hh
        i = jax.nn.sigmoid(gates[:, 0 * H:1 * H])
        f = jax.nn.sigmoid(gates[:, 1 * H:2 * H])
        g = jnp.tanh(gates[:, 2 * H:3 * H])
        o = jax.nn.sigmoid(gates[:, 3 * H:4 * H])
        c_new = f * c + i * g
        h_new = o * jnp.tanh(c_new)
        return h_new, c_new

    def step(carry, x_t):
        h0, c0, h1, c1 = carry
        h0, c0 = cell(x_t, h0, c0, w_ih_l0, w_hh_l0, b_ih_l0, b_hh_l0)
        h1, c1 = cell(h0, h1, c1, w_ih_l1, w_hh_l1, b_ih_l1, b_hh_l1)
        return (h0, c0, h1, c1), h1

    z = jnp.zeros((B, H), jnp.float32)
    _, hs = jax.lax.scan(step, (z, z, z, z), x)
    return hs @ w_reg.T + b_reg


if __name__ == "__main__":
    SEQ, BATCH, INPUT, HIDDEN, OUTPUT = 8, 2, 4, 32, 1
    T_BLOCK = 4   # timesteps per grid step (exercises state carry across steps)

    key = jax.random.PRNGKey(0)
    kx, kp = jax.random.split(key)
    x = jax.random.normal(kx, (SEQ, BATCH, INPUT), jnp.float32)

    params_kernel, params_torchlike = init_params(kp, INPUT, HIDDEN, OUTPUT)

    y = lstm_reg_forward(x, params_kernel, HIDDEN, OUTPUT, t_block=T_BLOCK)
    y = jax.block_until_ready(y)

    y_ref = lstm_reg_reference(x, params_torchlike, HIDDEN)
    assert y.shape == (SEQ, BATCH, OUTPUT)
    assert jnp.allclose(y, y_ref, atol=1e-4, rtol=1e-4), "mismatch vs reference"

    print("KERNEL_OK")
</pallas_src>

<mosaic_0001>
module attributes {stable_mosaic.version = 11 : i64} {
  func.func @lstm_reg_kernel(%arg0: i32, %arg1: memref<4x8x128xf32, #tpu.memory_space<vmem>>, %arg2: memref<32x128xf32, #tpu.memory_space<vmem>>, %arg3: memref<32x128xf32, #tpu.memory_space<vmem>>, %arg4: memref<32x128xf32, #tpu.memory_space<vmem>>, %arg5: memref<1x128xf32, #tpu.memory_space<vmem>>, %arg6: memref<4x8x32xf32, #tpu.memory_space<vmem>>, %arg7: memref<8x32xf32, #tpu.memory_space<vmem>>, %arg8: memref<8x32xf32, #tpu.memory_space<vmem>>, %arg9: memref<8x32xf32, #tpu.memory_space<vmem>>, %arg10: memref<8x32xf32, #tpu.memory_space<vmem>>) attributes {dimension_semantics = [#tpu.dimension_semantics<arbitrary>], iteration_bounds = array<i64: 2>, scalar_prefetch = 0 : i64, scratch_operands = 4 : i64, tpu.core_type = #tpu.core_type<tc>, window_params = [{transform_indices = @transform_0, window_bounds = array<i64: 4, 8, 128>}, {pipeline_mode = #tpu.pipeline_mode<synchronous>, transform_indices = @transform_1, window_bounds = array<i64: 32, 128>}, {pipeline_mode = #tpu.pipeline_mode<synchronous>, transform_indices = @transform_2, window_bounds = array<i64: 32, 128>}, {pipeline_mode = #tpu.pipeline_mode<synchronous>, transform_indices = @transform_3, window_bounds = array<i64: 32, 128>}, {pipeline_mode = #tpu.pipeline_mode<synchronous>, transform_indices = @transform_4, window_bounds = array<i64: 1, 128>}, {transform_indices = @transform_5, window_bounds = array<i64: 4, 8, 32>}]} {
    %c0_i32 = arith.constant 0 : i32
    %0 = arith.cmpi eq, %arg0, %c0_i32 : i32
    %1 = arith.extui %0 : i1 to i32
    %c0_i32_0 = arith.constant 0 : i32
    %2 = arith.cmpi ne, %1, %c0_i32_0 : i32
    scf.if %2 {
      %cst_76 = arith.constant 0.000000e+00 : f32
      %271 = vector.broadcast %cst_76 : f32 to vector<8x32xf32>
      %c0_77 = arith.constant 0 : index
      %c0_78 = arith.constant 0 : index
      %272 = vector.load %arg7[%c0_77, %c0_78] : memref<8x32xf32, #tpu.memory_space<vmem>>, vector<8x32xf32>
      tpu.vector_store %arg7[%c0_77, %c0_78], %271 {strides = array<i32>} : memref<8x32xf32, #tpu.memory_space<vmem>>, vector<8x32xf32>,
      %cst_79 = arith.constant 0.000000e+00 : f32
      %273 = vector.broadcast %cst_79 : f32 to vector<8x32xf32>
      %c0_80 = arith.constant 0 : index
      %c0_81 = arith.constant 0 : index
      %274 = vector.load %arg8[%c0_80, %c0_81] : memref<8x32xf32, #tpu.memory_space<vmem>>, vector<8x32xf32>
      tpu.vector_store %arg8[%c0_80, %c0_81], %273 {strides = array<i32>} : memref<8x32xf32, #tpu.memory_space<vmem>>, vector<8x32xf32>,
      %cst_82 = arith.constant 0.000000e+00 : f32
      %275 = vector.broadcast %cst_82 : f32 to vector<8x32xf32>
      %c0_83 = arith.constant 0 : index
      %c0_84 = arith.constant 0 : index
      %276 = vector.load %arg9[%c0_83, %c0_84] : memref<8x32xf32, #tpu.memory_space<vmem>>, vector<8x32xf32>
      tpu.vector_store %arg9[%c0_83, %c0_84], %275 {strides = array<i32>} : memref<8x32xf32, #tpu.memory_space<vmem>>, vector<8x32xf32>,
      %cst_85 = arith.constant 0.000000e+00 : f32
      %277 = vector.broadcast %cst_85 : f32 to vector<8x32xf32>
      %c0_86 = arith.constant 0 : index
      %c0_87 = arith.constant 0 : index
      %278 = vector.load %arg10[%c0_86, %c0_87] : memref<8x32xf32, #tpu.memory_space<vmem>>, vector<8x32xf32>
      tpu.vector_store %arg10[%c0_86, %c0_87], %277 {strides = array<i32>} : memref<8x32xf32, #tpu.memory_space<vmem>>, vector<8x32xf32>,
    } else {
    }
    %c0 = arith.constant 0 : index
    %c0_1 = arith.constant 0 : index
    %3 = vector.load %arg2[%c0, %c0_1] : memref<32x128xf32, #tpu.memory_space<vmem>>, vector<32x128xf32>
    %c0_2 = arith.constant 0 : index
    %c0_3 = arith.constant 0 : index
    %4 = vector.load %arg3[%c0_2, %c0_3] : memref<32x128xf32, #tpu.memory_space<vmem>>, vector<32x128xf32>
    %c0_4 = arith.constant 0 : index
    %c0_5 = arith.constant 0 : index
    %5 = vector.load %arg4[%c0_4, %c0_5] : memref<32x128xf32, #tpu.memory_space<vmem>>, vector<32x128xf32>
    %c0_6 = arith.constant 0 : index
    %c0_7 = arith.constant 0 : index
    %6 = vector.load %arg5[%c0_6, %c0_7] : memref<1x128xf32, #tpu.memory_space<vmem>>, vector<1x128xf32>
    %c0_8 = arith.constant 0 : index
    %c0_9 = arith.constant 0 : index
    %7 = vector.load %arg7[%c0_8, %c0_9] : memref<8x32xf32, #tpu.memory_space<vmem>>, vector<8x32xf32>
    %c0_10 = arith.constant 0 : index
    %c0_11 = arith.constant 0 : index
    %8 = vector.load %arg8[%c0_10, %c0_11] : memref<8x32xf32, #tpu.memory_space<vmem>>, vector<8x32xf32>
    %c0_12 = arith.constant 0 : index
    %c0_13 = arith.constant 0 : index
    %9 = vector.load %arg9[%c0_12, %c0_13] : memref<8x32xf32, #tpu.memory_space<vmem>>, vector<8x32xf32>
    %c0_14 = arith.constant 0 : index
    %c0_15 = arith.constant 0 : index
    %10 = vector.load %arg10[%c0_14, %c0_15] : memref<8x32xf32, #tpu.memory_space<vmem>>, vector<8x32xf32>
    %c0_i32_16 = arith.constant 0 : i32
    %11 = arith.index_cast %c0_i32_16 : i32 to index
    %c0_17 = arith.constant 0 : index
    %c0_18 = arith.constant 0 : index
    %12 = vector.load %arg1[%11, %c0_17, %c0_18] : memref<4x8x128xf32, #tpu.memory_space<vmem>>, vector<1x8x128xf32>
    %13 = vector.shape_cast %12 : vector<1x8x128xf32> to vector<8x128xf32>
    %cst = arith.constant dense<0.000000e+00> : vector<8x128xf32>
    %14 = tpu.matmul %7, %3, %cst {dimension_numbers = #tpu.dot_dimension_numbers<[1], [0], [0], [1], [0, 0, 1, 1], [], []>} : vector<8x32xf32>, vector<32x128xf32>, vector<8x128xf32> -> vector<8x128xf32>
    %15 = arith.addf %13, %14 : vector<8x128xf32>
    %16 = vector.extract_strided_slice %15 {offsets = [0, 0], sizes = [8, 32], strides = [1, 1]} : vector<8x128xf32> to vector<8x32xf32>
    %17 = arith.negf %16 : vector<8x32xf32>
    %18 = math.exp %17 : vector<8x32xf32>
    %cst_19 = arith.constant 1.000000e+00 : f32
    %19 = vector.broadcast %cst_19 : f32 to vector<8x32xf32>
    %20 = arith.addf %19, %18 : vector<8x32xf32>
    %21 = arith.divf %19, %20 : vector<8x32xf32>
    %22 = vector.extract_strided_slice %15 {offsets = [0, 32], sizes = [8, 32], strides = [1, 1]} : vector<8x128xf32> to vector<8x32xf32>
    %23 = arith.negf %22 : vector<8x32xf32>
    %24 = math.exp %23 : vector<8x32xf32>
    %cst_20 = arith.constant 1.000000e+00 : f32
    %25 = vector.broadcast %cst_20 : f32 to vector<8x32xf32>
    %26 = arith.addf %25, %24 : vector<8x32xf32>
    %27 = arith.divf %25, %26 : vector<8x32xf32>
    %28 = vector.extract_strided_slice %15 {offsets = [0, 64], sizes = [8, 32], strides = [1, 1]} : vector<8x128xf32> to vector<8x32xf32>
    %29 = math.tanh %28 : vector<8x32xf32>
    %30 = vector.extract_strided_slice %15 {offsets = [0, 96], sizes = [8, 32], strides = [1, 1]} : vector<8x128xf32> to vector<8x32xf32>
    %31 = arith.negf %30 : vector<8x32xf32>
    %32 = math.exp %31 : vector<8x32xf32>
    %cst_21 = arith.constant 1.000000e+00 : f32
    %33 = vector.broadcast %cst_21 : f32 to vector<8x32xf32>
    %34 = arith.addf %33, %32 : vector<8x32xf32>
    %35 = arith.divf %33, %34 : vector<8x32xf32>
    %36 = arith.mulf %27, %8 : vector<8x32xf32>
    %37 = arith.mulf %21, %29 : vector<8x32xf32>
    %38 = arith.addf %36, %37 : vector<8x32xf32>
    %39 = math.tanh %38 : vector<8x32xf32>
    %40 = arith.mulf %35, %39 : vector<8x32xf32>
    %cst_22 = arith.constant dense<0.000000e+00> : vector<8x128xf32>
    %41 = tpu.matmul %40, %4, %cst_22 {dimension_numbers = #tpu.dot_dimension_numbers<[1], [0], [0], [1], [0, 0, 1, 1], [], []>} : vector<8x32xf32>, vector<32x128xf32>, vector<8x128xf32> -> vector<8x128xf32>
    %cst_23 = arith.constant dense<0.000000e+00> : vector<8x128xf32>
    %42 = tpu.matmul %9, %5, %cst_23 {dimension_numbers = #tpu.dot_dimension_numbers<[1], [0], [0], [1], [0, 0, 1, 1], [], []>} : vector<8x32xf32>, vector<32x128xf32>, vector<8x128xf32> -> vector<8x128xf32>
    %43 = arith.addf %41, %42 : vector<8x128xf32>
    %44 = vector.broadcast %6 : vector<1x128xf32> to vector<8x128xf32>
    %45 = arith.addf %43, %44 : vector<8x128xf32>
    %46 = vector.extract_strided_slice %45 {offsets = [0, 0], sizes = [8, 32], strides = [1, 1]} : vector<8x128xf32> to vector<8x32xf32>
    %47 = arith.negf %46 : vector<8x32xf32>
    %48 = math.exp %47 : vector<8x32xf32>
    %cst_24 = arith.constant 1.000000e+00 : f32
    %49 = vector.broadcast %cst_24 : f32 to vector<8x32xf32>
    %50 = arith.addf %49, %48 : vector<8x32xf32>
    %51 = arith.divf %49, %50 : vector<8x32xf32>
    %52 = vector.extract_strided_slice %45 {offsets = [0, 32], sizes = [8, 32], strides = [1, 1]} : vector<8x128xf32> to vector<8x32xf32>
    %53 = arith.negf %52 : vector<8x32xf32>
    %54 = math.exp %53 : vector<8x32xf32>
    %cst_25 = arith.constant 1.000000e+00 : f32
    %55 = vector.broadcast %cst_25 : f32 to vector<8x32xf32>
    %56 = arith.addf %55, %54 : vector<8x32xf32>
    %57 = arith.divf %55, %56 : vector<8x32xf32>
    %58 = vector.extract_strided_slice %45 {offsets = [0, 64], sizes = [8, 32], strides = [1, 1]} : vector<8x128xf32> to vector<8x32xf32>
    %59 = math.tanh %58 : vector<8x32xf32>
    %60 = vector.extract_strided_slice %45 {offsets = [0, 96], sizes = [8, 32], strides = [1, 1]} : vector<8x128xf32> to vector<8x32xf32>
    %61 = arith.negf %60 : vector<8x32xf32>
    %62 = math.exp %61 : vector<8x32xf32>
    %cst_26 = arith.constant 1.000000e+00 : f32
    %63 = vector.broadcast %cst_26 : f32 to vector<8x32xf32>
    %64 = arith.addf %63, %62 : vector<8x32xf32>
    %65 = arith.divf %63, %64 : vector<8x32xf32>
    %66 = arith.mulf %57, %10 : vector<8x32xf32>
    %67 = arith.mulf %51, %59 : vector<8x32xf32>
    %68 = arith.addf %66, %67 : vector<8x32xf32>
    %69 = math.tanh %68 : vector<8x32xf32>
    %70 = arith.mulf %65, %69 : vector<8x32xf32>
    %71 = arith.index_cast %c0_i32_16 : i32 to index
    %c0_27 = arith.constant 0 : index
    %c0_28 = arith.constant 0 : index
    %72 = vector.load %arg6[%71, %c0_27, %c0_28] : memref<4x8x32xf32, #tpu.memory_space<vmem>>, vector<1x8x32xf32>
    %73 = vector.shape_cast %72 : vector<1x8x32xf32> to vector<8x32xf32>
    %74 = vector.shape_cast %70 : vector<8x32xf32> to vector<1x8x32xf32>
    tpu.vector_store %arg6[%71, %c0_27, %c0_28], %74 {strides = array<i32>} : memref<4x8x32xf32, #tpu.memory_space<vmem>>, vector<1x8x32xf32>,
    %c1_i32 = arith.constant 1 : i32
    %75 = arith.index_cast %c1_i32 : i32 to index
    %c0_29 = arith.constant 0 : index
    %c0_30 = arith.constant 0 : index
    %76 = vector.load %arg1[%75, %c0_29, %c0_30] : memref<4x8x128xf32, #tpu.memory_space<vmem>>, vector<1x8x128xf32>
    %77 = vector.shape_cast %76 : vector<1x8x128xf32> to vector<8x128xf32>
    %cst_31 = arith.constant dense<0.000000e+00> : vector<8x128xf32>
    %78 = tpu.matmul %40, %3, %cst_31 {dimension_numbers = #tpu.dot_dimension_numbers<[1], [0], [0], [1], [0, 0, 1, 1], [], []>} : vector<8x32xf32>, vector<32x128xf32>, vector<8x128xf32> -> vector<8x128xf32>
    %79 = arith.addf %77, %78 : vector<8x128xf32>
    %80 = vector.extract_strided_slice %79 {offsets = [0, 0], sizes = [8, 32], strides = [1, 1]} : vector<8x128xf32> to vector<8x32xf32>
    %81 = arith.negf %80 : vector<8x32xf32>
    %82 = math.exp %81 : vector<8x32xf32>
    %cst_32 = arith.constant 1.000000e+00 : f32
    %83 = vector.broadcast %cst_32 : f32 to vector<8x32xf32>
    %84 = arith.addf %83, %82 : vector<8x32xf32>
    %85 = arith.divf %83, %84 : vector<8x32xf32>
    %86 = vector.extract_strided_slice %79 {offsets = [0, 32], sizes = [8, 32], strides = [1, 1]} : vector<8x128xf32> to vector<8x32xf32>
    %87 = arith.negf %86 : vector<8x32xf32>
    %88 = math.exp %87 : vector<8x32xf32>
    %cst_33 = arith.constant 1.000000e+00 : f32
    %89 = vector.broadcast %cst_33 : f32 to vector<8x32xf32>
    %90 = arith.addf %89, %88 : vector<8x32xf32>
    %91 = arith.divf %89, %90 : vector<8x32xf32>
    %92 = vector.extract_strided_slice %79 {offsets = [0, 64], sizes = [8, 32], strides = [1, 1]} : vector<8x128xf32> to vector<8x32xf32>
    %93 = math.tanh %92 : vector<8x32xf32>
    %94 = vector.extract_strided_slice %79 {offsets = [0, 96], sizes = [8, 32], strides = [1, 1]} : vector<8x128xf32> to vector<8x32xf32>
    %95 = arith.negf %94 : vector<8x32xf32>
    %96 = math.exp %95 : vector<8x32xf32>
    %cst_34 = arith.constant 1.000000e+00 : f32
    %97 = vector.broadcast %cst_34 : f32 to vector<8x32xf32>
    %98 = arith.addf %97, %96 : vector<8x32xf32>
    %99 = arith.divf %97, %98 : vector<8x32xf32>
    %100 = arith.mulf %91, %38 : vector<8x32xf32>
    %101 = arith.mulf %85, %93 : vector<8x32xf32>
    %102 = arith.addf %100, %101 : vector<8x32xf32>
    %103 = math.tanh %102 : vector<8x32xf32>
    %104 = arith.mulf %99, %103 : vector<8x32xf32>
    %cst_35 = arith.constant dense<0.000000e+00> : vector<8x128xf32>
    %105 = tpu.matmul %104, %4, %cst_35 {dimension_numbers = #tpu.dot_dimension_numbers<[1], [0], [0], [1], [0, 0, 1, 1], [], []>} : vector<8x32xf32>, vector<32x128xf32>, vector<8x128xf32> -> vector<8x128xf32>
    %cst_36 = arith.constant dense<0.000000e+00> : vector<8x128xf32>
    %106 = tpu.matmul %70, %5, %cst_36 {dimension_numbers = #tpu.dot_dimension_numbers<[1], [0], [0], [1], [0, 0, 1, 1], [], []>} : vector<8x32xf32>, vector<32x128xf32>, vector<8x128xf32> -> vector<8x128xf32>
    %107 = arith.addf %105, %106 : vector<8x128xf32>
    %108 = vector.broadcast %6 : vector<1x128xf32> to vector<8x128xf32>
    %109 = arith.addf %107, %108 : vector<8x128xf32>
    %110 = vector.extract_strided_slice %109 {offsets = [0, 0], sizes = [8, 32], strides = [1, 1]} : vector<8x128xf32> to vector<8x32xf32>
    %111 = arith.negf %110 : vector<8x32xf32>
    %112 = math.exp %111 : vector<8x32xf32>
    %cst_37 = arith.constant 1.000000e+00 : f32
    %113 = vector.broadcast %cst_37 : f32 to vector<8x32xf32>
    %114 = arith.addf %113, %112 : vector<8x32xf32>
    %115 = arith.divf %113, %114 : vector<8x32xf32>
    %116 = vector.extract_strided_slice %109 {offsets = [0, 32], sizes = [8, 32], strides = [1, 1]} : vector<8x128xf32> to vector<8x32xf32>
    %117 = arith.negf %116 : vector<8x32xf32>
    %118 = math.exp %117 : vector<8x32xf32>
    %cst_38 = arith.constant 1.000000e+00 : f32
    %119 = vector.broadcast %cst_38 : f32 to vector<8x32xf32>
    %120 = arith.addf %119, %118 : vector<8x32xf32>
    %121 = arith.divf %119, %120 : vector<8x32xf32>
    %122 = vector.extract_strided_slice %109 {offsets = [0, 64], sizes = [8, 32], strides = [1, 1]} : vector<8x128xf32> to vector<8x32xf32>
    %123 = math.tanh %122 : vector<8x32xf32>
    %124 = vector.extract_strided_slice %109 {offsets = [0, 96], sizes = [8, 32], strides = [1, 1]} : vector<8x128xf32> to vector<8x32xf32>
    %125 = arith.negf %124 : vector<8x32xf32>
    %126 = math.exp %125 : vector<8x32xf32>
    %cst_39 = arith.constant 1.000000e+00 : f32
    %127 = vector.broadcast %cst_39 : f32 to vector<8x32xf32>
    %128 = arith.addf %127, %126 : vector<8x32xf32>
    %129 = arith.divf %127, %128 : vector<8x32xf32>
    %130 = arith.mulf %121, %68 : vector<8x32xf32>
    %131 = arith.mulf %115, %123 : vector<8x32xf32>
    %132 = arith.addf %130, %131 : vector<8x32xf32>
    %133 = math.tanh %132 : vector<8x32xf32>
    %134 = arith.mulf %129, %133 : vector<8x32xf32>
    %135 = arith.index_cast %c1_i32 : i32 to index
    %c0_40 = arith.constant 0 : index
    %c0_41 = arith.constant 0 : index
    %136 = vector.load %arg6[%135, %c0_40, %c0_41] : memref<4x8x32xf32, #tpu.memory_space<vmem>>, vector<1x8x32xf32>
    %137 = vector.shape_cast %136 : vector<1x8x32xf32> to vector<8x32xf32>
    %138 = vector.shape_cast %134 : vector<8x32xf32> to vector<1x8x32xf32>
    tpu.vector_store %arg6[%135, %c0_40, %c0_41], %138 {strides = array<i32>} : memref<4x8x32xf32, #tpu.memory_space<vmem>>, vector<1x8x32xf32>,
    %c2_i32 = arith.constant 2 : i32
    %139 = arith.index_cast %c2_i32 : i32 to index
    %c0_42 = arith.constant 0 : index
    %c0_43 = arith.constant 0 : index
    %140 = vector.load %arg1[%139, %c0_42, %c0_43] : memref<4x8x128xf32, #tpu.memory_space<vmem>>, vector<1x8x128xf32>
    %141 = vector.shape_cast %140 : vector<1x8x128xf32> to vector<8x128xf32>
    %cst_44 = arith.constant dense<0.000000e+00> : vector<8x128xf32>
    %142 = tpu.matmul %104, %3, %cst_44 {dimension_numbers = #tpu.dot_dimension_numbers<[1], [0], [0], [1], [0, 0, 1, 1], [], []>} : vector<8x32xf32>, vector<32x128xf32>, vector<8x128xf32> -> vector<8x128xf32>
    %143 = arith.addf %141, %142 : vector<8x128xf32>
    %144 = vector.extract_strided_slice %143 {offsets = [0, 0], sizes = [8, 32], strides = [1, 1]} : vector<8x128xf32> to vector<8x32xf32>
    %145 = arith.negf %144 : vector<8x32xf32>
    %146 = math.exp %145 : vector<8x32xf32>
    %cst_45 = arith.constant 1.000000e+00 : f32
    %147 = vector.broadcast %cst_45 : f32 to vector<8x32xf32>
    %148 = arith.addf %147, %146 : vector<8x32xf32>
    %149 = arith.divf %147, %148 : vector<8x32xf32>
    %150 = vector.extract_strided_slice %143 {offsets = [0, 32], sizes = [8, 32], strides = [1, 1]} : vector<8x128xf32> to vector<8x32xf32>
    %151 = arith.negf %150 : vector<8x32xf32>
    %152 = math.exp %151 : vector<8x32xf32>
    %cst_46 = arith.constant 1.000000e+00 : f32
    %153 = vector.broadcast %cst_46 : f32 to vector<8x32xf32>
    %154 = arith.addf %153, %152 : vector<8x32xf32>
    %155 = arith.divf %153, %154 : vector<8x32xf32>
    %156 = vector.extract_strided_slice %143 {offsets = [0, 64], sizes = [8, 32], strides = [1, 1]} : vector<8x128xf32> to vector<8x32xf32>
    %157 = math.tanh %156 : vector<8x32xf32>
    %158 = vector.extract_strided_slice %143 {offsets = [0, 96], sizes = [8, 32], strides = [1, 1]} : vector<8x128xf32> to vector<8x32xf32>
    %159 = arith.negf %158 : vector<8x32xf32>
    %160 = math.exp %159 : vector<8x32xf32>
    %cst_47 = arith.constant 1.000000e+00 : f32
    %161 = vector.broadcast %cst_47 : f32 to vector<8x32xf32>
    %162 = arith.addf %161, %160 : vector<8x32xf32>
    %163 = arith.divf %161, %162 : vector<8x32xf32>
    %164 = arith.mulf %155, %102 : vector<8x32xf32>
    %165 = arith.mulf %149, %157 : vector<8x32xf32>
    %166 = arith.addf %164, %165 : vector<8x32xf32>
    %167 = math.tanh %166 : vector<8x32xf32>
    %168 = arith.mulf %163, %167 : vector<8x32xf32>
    %cst_48 = arith.constant dense<0.000000e+00> : vector<8x128xf32>
    %169 = tpu.matmul %168, %4, %cst_48 {dimension_numbers = #tpu.dot_dimension_numbers<[1], [0], [0], [1], [0, 0, 1, 1], [], []>} : vector<8x32xf32>, vector<32x128xf32>, vector<8x128xf32> -> vector<8x128xf32>
    %cst_49 = arith.constant dense<0.000000e+00> : vector<8x128xf32>
    %170 = tpu.matmul %134, %5, %cst_49 {dimension_numbers = #tpu.dot_dimension_numbers<[1], [0], [0], [1], [0, 0, 1, 1], [], []>} : vector<8x32xf32>, vector<32x128xf32>, vector<8x128xf32> -> vector<8x128xf32>
    %171 = arith.addf %169, %170 : vector<8x128xf32>
    %172 = vector.broadcast %6 : vector<1x128xf32> to vector<8x128xf32>
    %173 = arith.addf %171, %172 : vector<8x128xf32>
    %174 = vector.extract_strided_slice %173 {offsets = [0, 0], sizes = [8, 32], strides = [1, 1]} : vector<8x128xf32> to vector<8x32xf32>
    %175 = arith.negf %174 : vector<8x32xf32>
    %176 = math.exp %175 : vector<8x32xf32>
    %cst_50 = arith.constant 1.000000e+00 : f32
    %177 = vector.broadcast %cst_50 : f32 to vector<8x32xf32>
    %178 = arith.addf %177, %176 : vector<8x32xf32>
    %179 = arith.divf %177, %178 : vector<8x32xf32>
    %180 = vector.extract_strided_slice %173 {offsets = [0, 32], sizes = [8, 32], strides = [1, 1]} : vector<8x128xf32> to vector<8x32xf32>
    %181 = arith.negf %180 : vector<8x32xf32>
    %182 = math.exp %181 : vector<8x32xf32>
    %cst_51 = arith.constant 1.000000e+00 : f32
    %183 = vector.broadcast %cst_51 : f32 to vector<8x32xf32>
    %184 = arith.addf %183, %182 : vector<8x32xf32>
    %185 = arith.divf %183, %184 : vector<8x32xf32>
    %186 = vector.extract_strided_slice %173 {offsets = [0, 64], sizes = [8, 32], strides = [1, 1]} : vector<8x128xf32> to vector<8x32xf32>
    %187 = math.tanh %186 : vector<8x32xf32>
    %188 = vector.extract_strided_slice %173 {offsets = [0, 96], sizes = [8, 32], strides = [1, 1]} : vector<8x128xf32> to vector<8x32xf32>
    %189 = arith.negf %188 : vector<8x32xf32>
    %190 = math.exp %189 : vector<8x32xf32>
    %cst_52 = arith.constant 1.000000e+00 : f32
    %191 = vector.broadcast %cst_52 : f32 to vector<8x32xf32>
    %192 = arith.addf %191, %190 : vector<8x32xf32>
    %193 = arith.divf %191, %192 : vector<8x32xf32>
    %194 = arith.mulf %185, %132 : vector<8x32xf32>
    %195 = arith.mulf %179, %187 : vector<8x32xf32>
    %196 = arith.addf %194, %195 : vector<8x32xf32>
    %197 = math.tanh %196 : vector<8x32xf32>
    %198 = arith.mulf %193, %197 : vector<8x32xf32>
    %199 = arith.index_cast %c2_i32 : i32 to index
    %c0_53 = arith.constant 0 : index
    %c0_54 = arith.constant 0 : index
    %200 = vector.load %arg6[%199, %c0_53, %c0_54] : memref<4x8x32xf32, #tpu.memory_space<vmem>>, vector<1x8x32xf32>
    %201 = vector.shape_cast %200 : vector<1x8x32xf32> to vector<8x32xf32>
    %202 = vector.shape_cast %198 : vector<8x32xf32> to vector<1x8x32xf32>
    tpu.vector_store %arg6[%199, %c0_53, %c0_54], %202 {strides = array<i32>} : memref<4x8x32xf32, #tpu.memory_space<vmem>>, vector<1x8x32xf32>,
    %c3_i32 = arith.constant 3 : i32
    %203 = arith.index_cast %c3_i32 : i32 to index
    %c0_55 = arith.constant 0 : index
    %c0_56 = arith.constant 0 : index
    %204 = vector.load %arg1[%203, %c0_55, %c0_56] : memref<4x8x128xf32, #tpu.memory_space<vmem>>, vector<1x8x128xf32>
    %205 = vector.shape_cast %204 : vector<1x8x128xf32> to vector<8x128xf32>
    %cst_57 = arith.constant dense<0.000000e+00> : vector<8x128xf32>
    %206 = tpu.matmul %168, %3, %cst_57 {dimension_numbers = #tpu.dot_dimension_numbers<[1], [0], [0], [1], [0, 0, 1, 1], [], []>} : vector<8x32xf32>, vector<32x128xf32>, vector<8x128xf32> -> vector<8x128xf32>
    %207 = arith.addf %205, %206 : vector<8x128xf32>
    %208 = vector.extract_strided_slice %207 {offsets = [0, 0], sizes = [8, 32], strides = [1, 1]} : vector<8x128xf32> to vector<8x32xf32>
    %209 = arith.negf %208 : vector<8x32xf32>
    %210 = math.exp %209 : vector<8x32xf32>
    %cst_58 = arith.constant 1.000000e+00 : f32
    %211 = vector.broadcast %cst_58 : f32 to vector<8x32xf32>
    %212 = arith.addf %211, %210 : vector<8x32xf32>
    %213 = arith.divf %211, %212 : vector<8x32xf32>
    %214 = vector.extract_strided_slice %207 {offsets = [0, 32], sizes = [8, 32], strides = [1, 1]} : vector<8x128xf32> to vector<8x32xf32>
    %215 = arith.negf %214 : vector<8x32xf32>
    %216 = math.exp %215 : vector<8x32xf32>
    %cst_59 = arith.constant 1.000000e+00 : f32
    %217 = vector.broadcast %cst_59 : f32 to vector<8x32xf32>
    %218 = arith.addf %217, %216 : vector<8x32xf32>
    %219 = arith.divf %217, %218 : vector<8x32xf32>
    %220 = vector.extract_strided_slice %207 {offsets = [0, 64], sizes = [8, 32], strides = [1, 1]} : vector<8x128xf32> to vector<8x32xf32>
    %221 = math.tanh %220 : vector<8x32xf32>
    %222 = vector.extract_strided_slice %207 {offsets = [0, 96], sizes = [8, 32], strides = [1, 1]} : vector<8x128xf32> to vector<8x32xf32>
    %223 = arith.negf %222 : vector<8x32xf32>
    %224 = math.exp %223 : vector<8x32xf32>
    %cst_60 = arith.constant 1.000000e+00 : f32
    %225 = vector.broadcast %cst_60 : f32 to vector<8x32xf32>
    %226 = arith.addf %225, %224 : vector<8x32xf32>
    %227 = arith.divf %225, %226 : vector<8x32xf32>
    %228 = arith.mulf %219, %166 : vector<8x32xf32>
    %229 = arith.mulf %213, %221 : vector<8x32xf32>
    %230 = arith.addf %228, %229 : vector<8x32xf32>
    %231 = math.tanh %230 : vector<8x32xf32>
    %232 = arith.mulf %227, %231 : vector<8x32xf32>
    %cst_61 = arith.constant dense<0.000000e+00> : vector<8x128xf32>
    %233 = tpu.matmul %232, %4, %cst_61 {dimension_numbers = #tpu.dot_dimension_numbers<[1], [0], [0], [1], [0, 0, 1, 1], [], []>} : vector<8x32xf32>, vector<32x128xf32>, vector<8x128xf32> -> vector<8x128xf32>
    %cst_62 = arith.constant dense<0.000000e+00> : vector<8x128xf32>
    %234 = tpu.matmul %198, %5, %cst_62 {dimension_numbers = #tpu.dot_dimension_numbers<[1], [0], [0], [1], [0, 0, 1, 1], [], []>} : vector<8x32xf32>, vector<32x128xf32>, vector<8x128xf32> -> vector<8x128xf32>
    %235 = arith.addf %233, %234 : vector<8x128xf32>
    %236 = vector.broadcast %6 : vector<1x128xf32> to vector<8x128xf32>
    %237 = arith.addf %235, %236 : vector<8x128xf32>
    %238 = vector.extract_strided_slice %237 {offsets = [0, 0], sizes = [8, 32], strides = [1, 1]} : vector<8x128xf32> to vector<8x32xf32>
    %239 = arith.negf %238 : vector<8x32xf32>
    %240 = math.exp %239 : vector<8x32xf32>
    %cst_63 = arith.constant 1.000000e+00 : f32
    %241 = vector.broadcast %cst_63 : f32 to vector<8x32xf32>
    %242 = arith.addf %241, %240 : vector<8x32xf32>
    %243 = arith.divf %241, %242 : vector<8x32xf32>
    %244 = vector.extract_strided_slice %237 {offsets = [0, 32], sizes = [8, 32], strides = [1, 1]} : vector<8x128xf32> to vector<8x32xf32>
    %245 = arith.negf %244 : vector<8x32xf32>
    %246 = math.exp %245 : vector<8x32xf32>
    %cst_64 = arith.constant 1.000000e+00 : f32
    %247 = vector.broadcast %cst_64 : f32 to vector<8x32xf32>
    %248 = arith.addf %247, %246 : vector<8x32xf32>
    %249 = arith.divf %247, %248 : vector<8x32xf32>
    %250 = vector.extract_strided_slice %237 {offsets = [0, 64], sizes = [8, 32], strides = [1, 1]} : vector<8x128xf32> to vector<8x32xf32>
    %251 = math.tanh %250 : vector<8x32xf32>
    %252 = vector.extract_strided_slice %237 {offsets = [0, 96], sizes = [8, 32], strides = [1, 1]} : vector<8x128xf32> to vector<8x32xf32>
    %253 = arith.negf %252 : vector<8x32xf32>
    %254 = math.exp %253 : vector<8x32xf32>
    %cst_65 = arith.constant 1.000000e+00 : f32
    %255 = vector.broadcast %cst_65 : f32 to vector<8x32xf32>
    %256 = arith.addf %255, %254 : vector<8x32xf32>
    %257 = arith.divf %255, %256 : vector<8x32xf32>
    %258 = arith.mulf %249, %196 : vector<8x32xf32>
    %259 = arith.mulf %243, %251 : vector<8x32xf32>
    %260 = arith.addf %258, %259 : vector<8x32xf32>
    %261 = math.tanh %260 : vector<8x32xf32>
    %262 = arith.mulf %257, %261 : vector<8x32xf32>
    %263 = arith.index_cast %c3_i32 : i32 to index
    %c0_66 = arith.constant 0 : index
    %c0_67 = arith.constant 0 : index
    %264 = vector.load %arg6[%263, %c0_66, %c0_67] : memref<4x8x32xf32, #tpu.memory_space<vmem>>, vector<1x8x32xf32>
    %265 = vector.shape_cast %264 : vector<1x8x32xf32> to vector<8x32xf32>
    %266 = vector.shape_cast %262 : vector<8x32xf32> to vector<1x8x32xf32>
    tpu.vector_store %arg6[%263, %c0_66, %c0_67], %266 {strides = array<i32>} : memref<4x8x32xf32, #tpu.memory_space<vmem>>, vector<1x8x32xf32>,
    %c4_i32 = arith.constant 4 : i32
    %c0_68 = arith.constant 0 : index
    %c0_69 = arith.constant 0 : index
    %267 = vector.load %arg7[%c0_68, %c0_69] : memref<8x32xf32, #tpu.memory_space<vmem>>, vector<8x32xf32>
    tpu.vector_store %arg7[%c0_68, %c0_69], %232 {strides = array<i32>} : memref<8x32xf32, #tpu.memory_space<vmem>>, vector<8x32xf32>,
    %c0_70 = arith.constant 0 : index
    %c0_71 = arith.constant 0 : index
    %268 = vector.load %arg8[%c0_70, %c0_71] : memref<8x32xf32, #tpu.memory_space<vmem>>, vector<8x32xf32>
    tpu.vector_store %arg8[%c0_70, %c0_71], %230 {strides = array<i32>} : memref<8x32xf32, #tpu.memory_space<vmem>>, vector<8x32xf32>,
    %c0_72 = arith.constant 0 : index
    %c0_73 = arith.constant 0 : index
    %269 = vector.load %arg9[%c0_72, %c0_73] : memref<8x32xf32, #tpu.memory_space<vmem>>, vector<8x32xf32>
    tpu.vector_store %arg9[%c0_72, %c0_73], %262 {strides = array<i32>} : memref<8x32xf32, #tpu.memory_space<vmem>>, vector<8x32xf32>,
    %c0_74 = arith.constant 0 : index
    %c0_75 = arith.constant 0 : index
    %270 = vector.load %arg10[%c0_74, %c0_75] : memref<8x32xf32, #tpu.memory_space<vmem>>, vector<8x32xf32>
    tpu.vector_store %arg10[%c0_74, %c0_75], %260 {strides = array<i32>} : memref<8x32xf32, #tpu.memory_space<vmem>>, vector<8x32xf32>,
    return
  }
  func.func @transform_0(%arg0: i32) -> (i32, i32, i32) {
    %c0_i32 = arith.constant 0 : i32
    %c0_i32_0 = arith.constant 0 : i32
    %c0_i32_1 = arith.constant 0 : i32
    return %arg0, %c0_i32, %c0_i32_0 : i32, i32, i32
  }
  func.func @transform_1(%arg0: i32) -> (i32, i32) {
    %c0_i32 = arith.constant 0 : i32
    %c0_i32_0 = arith.constant 0 : i32
    %c0_i32_1 = arith.constant 0 : i32
    return %c0_i32, %c0_i32_0 : i32, i32
  }
  func.func @transform_2(%arg0: i32) -> (i32, i32) {
    %c0_i32 = arith.constant 0 : i32
    %c0_i32_0 = arith.constant 0 : i32
    %c0_i32_1 = arith.constant 0 : i32
    return %c0_i32, %c0_i32_0 : i32, i32
  }
  func.func @transform_3(%arg0: i32) -> (i32, i32) {
    %c0_i32 = arith.constant 0 : i32
    %c0_i32_0 = arith.constant 0 : i32
    %c0_i32_1 = arith.constant 0 : i32
    return %c0_i32, %c0_i32_0 : i32, i32
  }
  func.func @transform_4(%arg0: i32) -> (i32, i32) {
    %c0_i32 = arith.constant 0 : i32
    %c0_i32_0 = arith.constant 0 : i32
    %c0_i32_1 = arith.constant 0 : i32
    return %c0_i32, %c0_i32_0 : i32, i32
  }
  func.func @transform_5(%arg0: i32) -> (i32, i32, i32) {
    %c0_i32 = arith.constant 0 : i32
    %c0_i32_0 = arith.constant 0 : i32
    %c0_i32_1 = arith.constant 0 : i32
    return %arg0, %c0_i32, %c0_i32_0 : i32, i32, i32
  }
}

</mosaic_0001>

<bundles_post_ra>
// kernel: tpu_custom_call.1
= control target key start
LH: loop header
LB: loop body
LE: loop exit
PB: predicated region body
PF: predicated region fallthrough
CT: control target
= control target key end

     0   :  { %10 = vsyncpa [#allocation7], 0  ;;  %s2717_s0 = inlined_call_operand.hbm [shape: f32[8,8,128], index: 0, kind: input, shape index: {}]   ;;  %s2718_s1 = inlined_call_operand.hbm [shape: f32[32,128], index: 1, kind: input, shape index: {}]   ;;  %s2719_s2 = inlined_call_operand.hbm [shape: f32[32,128], index: 2, kind: input, shape index: {}]   ;;  %s2720_s3 = inlined_call_operand.hbm [shape: f32[32,128], index: 3, kind: input, shape index: {}]   ;;  %s2721_s4 = inlined_call_operand.vmem [shape: f32[1,128], index: 4, kind: input, shape index: {}]   ;;  %s2722_s5 = inlined_call_operand.hbm [shape: f32[8,8,32], index: 5, kind: output, shape index: {}]  }
   0x1   :  { %12 = vsyncpa [#allocation7 + $0x1], 0 }
   0x2   :  { %13 = vsyncpa [#allocation10], 0 }
   0x3   :  { %14 = vsyncpa [#allocation13], 0 }
   0x4   :  { %15 = vsyncpa [#allocation8], 0 }
   0x5   :  { %17 = vsyncpa [#allocation8 + $0x1], 0  ;;  %s2263_s18 = smov 0   ;;  %s2265_s19 = smov 0  }
   0x6   :  { %s2267_s20 = smov 0   ;;  %s2269_s21 = smov 0  }
   0x7 LB: > { %s2284_s22 = sadd.s32 4294967295, %s2215_s21   ;;  %s1561_s23 = sadd.s32 4294967294, %s2215_s21   ;;  %s2215_s21 = sphi %s2269_s21, %s2746_s21   ;;  %s2211_s20 = sphi %s2267_s20, %s2745_s20   ;;  %s2207_s19 = sphi %s2265_s19, %s2744_s19   ;;  %s2203_s18 = sphi %s2263_s18, %s2743_s18  }
   0x8   : > { %p43_p0 = scmp.ne.s32.totalorder %s2207_s19, %s2203_s18  ;;  %p2723_p1 = scmp.eq.s32.totalorder %s2284_s22, 0 }
   0x9   : > { %p157_p3 = scmp.eq.s32.totalorder %s1561_s23, 1  ;;  %p1562_p5 = scmp.ge.s32.totalorder %s2215_s21, 1 }
   0xa   : > { %p2293_p4 = por %p2723_p1, %p43_p0  ;;  %p164_p7 = scmp.lt.s32.totalorder %s2215_s21, 3 }
   0xb   : > { %p2298_p6 = por %p157_p3, %p43_p0  ;;  %s2217_s27 = smov [#allocation9]  }
   0xc   : > { %s2726_s24 = scalar_select %p2293_p4, 1, 0 }
   0xd   : > { %s2727_s25 = scalar_select %p2298_p6, 1, 0 }
   0xe   : > { %p2304_p9 = pnand %p1562_p5, %p164_p7  ;;  %s176_s28 = sshll.u32 %s2217_s27, 4  ;;  %s2308_s28 = int_to_ptr.vmem [resolvable:$true] %s176_s28 }
   0xf   : > { %s2218_s30 = smov [#allocation11]   ;;  %s2219_s7 = smov [#allocation12]  }
  0x10   : > { %s2728_s26 = scalar_select %p2304_p9, 1, 0 }
  0x11   : > { %p1891_p10 = pneg %p2304_p9  ;;  %s189_s6 = sshll.u32 %s2218_s30, 4  ;;  %s2319_s6 = int_to_ptr.vmem [resolvable:$true] %s189_s6 }
  0x12   : > { %s2321_s8 = sshll.u32 %s2219_s7, 4  ;;  %s2027_s11 = scalar_lea.hbm %s2718_s1, 512  ;;  %s203_s8 = int_to_ptr.vmem [resolvable:$true] %s2321_s8 }
  0x13   : > { %p2315_p12 = pnand %p1891_p10, %p2723_p1  ;;  %p2028_p13 = scmp.ne.s32.totalorder %s2718_s1, %s2027_s11 }
  0x14   : > { %p2034_p7 = scmp.lt.u32.totalorder %s2027_s11, %s2718_s1 }
  0x15   : > { %p2331_p0 = pneg %p2315_p12 }
  0x17   : > { %p2030_p3 = pnand %p2331_p0, %p2028_p13 }
  0x19   : > { %p2031_p5 = pneg %p2030_p3 }
  0x1b   : > { %p2036_p10 = pnand %p2034_p7, %p2031_p5 }
  0x1d   : > { %2039 = shalt.err (!%p2036_p10)
}
  0x1e   : > { %s2040_s17 = scalar_lea.vmem %s2308_s28, 512  ;;  %p2048_p2 = scmp.lt.s32.totalorder %s2308_s28, %s2308_s28 }
  0x1f   : > { %p2041_p11 = scmp.ne.s32.totalorder %s2308_s28, %s2040_s17  ;;  %p2049_p6 = scmp.lt.s32.totalorder %s2040_s17, %s2040_s17 }
  0x21   : > { %p2043_p8 = pnand %p2041_p11, %p2331_p0  ;;  %p2050_p13 = por %p2049_p6, %p2048_p2 }
  0x23   : > { %p2044_p1 = pneg %p2043_p8 }
  0x25   : > { %p2051_p3 = pnand %p2050_p13, %p2044_p1 }
  0x27   : > { %2054 = shalt.err (!%p2051_p3)
}
  0x28   : > { %s2220_s23 = smov 128   ;;  %s2221_s27 = smov 8  }
  0x29   : > { %1894 = dma.hbm_to_vmem [thread:$0]  (!%p2315_p12), %s2718_s1, 512, %s2308_s28, [#allocation10], %s2220_s23, %s2220_s23, %s2221_s27  }
  0x2a   : > { %s2055_s11 = scalar_lea.hbm %s2719_s2, 512 }
  0x2b   : > { %p2056_p1 = scmp.ne.s32.totalorder %s2719_s2, %s2055_s11  ;;  %p2062_p8 = scmp.lt.u32.totalorder %s2055_s11, %s2719_s2 }
  0x2d   : > { %p2058_p2 = pnand %p2056_p1, %p2331_p0 }
  0x2f   : > { %p2059_p6 = pneg %p2058_p2 }
  0x31   : > { %p2064_p11 = pnand %p2062_p8, %p2059_p6 }
  0x33   : > { %2067 = shalt.err (!%p2064_p11)
}
  0x34   : > { %s2068_s28 = scalar_lea.vmem %s2319_s6, 512  ;;  %p2076_p13 = scmp.lt.s32.totalorder %s2319_s6, %s2319_s6 }
  0x35   : > { %p2069_p5 = scmp.ne.s32.totalorder %s2319_s6, %s2068_s28  ;;  %p2077_p3 = scmp.lt.s32.totalorder %s2068_s28, %s2068_s28 }
  0x37   : > { %p2071_p7 = pnand %p2069_p5, %p2331_p0  ;;  %p2078_p1 = por %p2077_p3, %p2076_p13 }
  0x39   : > { %p2072_p10 = pneg %p2071_p7 }
  0x3b   : > { %p2079_p2 = pnand %p2078_p1, %p2072_p10 }
  0x3d   : > { %2082 = shalt.err (!%p2079_p2)
}
  0x3e   : > { %1897 = dma.hbm_to_vmem [thread:$0]  (!%p2315_p12), %s2719_s2, 512, %s2319_s6, [#allocation10], %s2220_s23, %s2220_s23, %s2221_s27  }
  0x3f   : > { %s2083_s10 = scalar_lea.hbm %s2720_s3, 512 }
  0x40   : > { %p2084_p6 = scmp.ne.s32.totalorder %s2720_s3, %s2083_s10  ;;  %p2090_p5 = scmp.lt.u32.totalorder %s2083_s10, %s2720_s3 }
  0x42   : > { %p2086_p8 = pnand %p2084_p6, %p2331_p0 }
  0x44   : > { %p2087_p11 = pneg %p2086_p8 }
  0x46   : > { %p2092_p7 = pnand %p2090_p5, %p2087_p11 }
  0x48   : > { %2095 = shalt.err (!%p2092_p7)
}
  0x49   : > { %s2096_s16 = scalar_lea.vmem %s203_s8, 512  ;;  %p2104_p1 = scmp.lt.s32.totalorder %s203_s8, %s203_s8 }
  0x4a   : > { %p2097_p10 = scmp.ne.s32.totalorder %s203_s8, %s2096_s16  ;;  %p2105_p2 = scmp.lt.s32.totalorder %s2096_s16, %s2096_s16 }
  0x4c   : > { %p2099_p13 = pnand %p2097_p10, %p2331_p0  ;;  %p2106_p4 = por %p2105_p2, %p2104_p1 }
  0x4e   : > { %p2100_p3 = pneg %p2099_p13 }
  0x50   : > { %p2107_p9 = pnand %p2106_p4, %p2100_p3 }
  0x52   : > { %2110 = shalt.err (!%p2107_p9)
}
  0x53   : > { %1900 = dma.hbm_to_vmem [thread:$0]  (!%p2315_p12), %s2720_s3, 512, %s203_s8, [#allocation13], %s2220_s23, %s2220_s23, %s2221_s27  }
  0x54   : > { %s2404_s14 = sadd.s32 1, %s2215_s21   ;;  %s30_s17 = sadd.s32 1, %s2211_s20 }
  0x55   : > { %s27_s29 = ssub.s32 %s2215_s21, %s2404_s14  ;;  %p37_p9 = scmp.ne.s32.totalorder %s2211_s20, %s2207_s19 }
  0x56   : > { %p28_p4 = scmp.eq.s32.totalorder %s27_s29, 0  ;;  %p38_p0 = scmp.eq.s32.totalorder %s2215_s21, 0 }
  0x57   : > { %p1912_p6 = scmp.lt.s32.totalorder %s2215_s21, 2  ;;  %p2731_p11 = scmp.eq.s32.totalorder %s2284_s22, 1 }
  0x58   : > { %s2414_s30 = scalar_select %p28_p4, %s2211_s20, %s30_s17  }
  0x59   : > { %p39_p8 = por %p38_p0, %p37_p9  ;;  %p2418_p5 = por %p2731_p11, %p37_p9 }
  0x5a   : > { %s219_s9 = sand.u32 1, %s2211_s20   ;;  %s1609_s10 = sshll.u32 %s2215_s21, 9 }
  0x5b   : > { %s1567_s8 = sshll.u32 %s219_s9, 5  ;;  %s2427_s13 = scalar_lea.hbm %s2717_s0, %s1609_s10 }
  0x5c   : > { %s223_s15 = scalar_lea.vmem [#allocation6], %s1567_s8  ;;  %p2429_p12 = pnand %p1912_p6, %p39_p8 }
  0x5d   : > { %s230_s16 = sshll.u32 %s223_s15, 4  ;;  %s2435_s28 = scalar_lea.sflag [#allocation7], %s219_s9  ;;  %s2433_s16 = int_to_ptr.vmem [resolvable:$true] %s230_s16 }
  0x5e   : > { %s2111_s29 = scalar_lea.hbm %s2427_s13, 512  ;;  %p2113_p10 = pneg %p2429_p12 }
  0x5f   : > { %p2112_p7 = scmp.ne.s32.totalorder %s2427_s13, %s2111_s29  ;;  %s2116_s8 = scalar_lea.hbm %s2717_s0, 1024 }
  0x60   : > { %p2117_p1 = scmp.lt.u32.totalorder %s2427_s13, %s2717_s0  ;;  %p2118_p2 = scmp.lt.u32.totalorder %s2116_s8, %s2111_s29 }
  0x61   : > { %p2114_p13 = pnand %p2113_p10, %p2112_p7  ;;  %p2120_p9 = scmp.lt.u32.totalorder %s2111_s29, %s2427_s13 }
  0x62   : > { %p2119_p4 = por %p2118_p2, %p2117_p1 }
  0x63   : > { %p2115_p3 = pneg %p2114_p13 }
  0x64   : > { %p2121_p0 = por %p2120_p9, %p2119_p4 }
  0x66   : > { %p2122_p6 = pnand %p2121_p0, %p2115_p3 }
  0x68   : > { %2125 = shalt.err (!%p2122_p6)
}
  0x69   : > { %s2126_s9 = scalar_lea.vmem %s2433_s16, 512  ;;  %s2222_s15 = smov [#allocation6]  }
  0x6a   : > { %p2127_p8 = scmp.ne.s32.totalorder %s2433_s16, %s2126_s9  ;;  %s2131_s17 = sshll.u32 %s2222_s15, 4  ;;  %s2132_s17 = int_to_ptr.vmem [resolvable:$false] %s2131_s17 }
  0x6b   : > { %s2133_s10 = scalar_lea.vmem %s2132_s17, 1024  ;;  %p2134_p13 = scmp.lt.s32.totalorder %s2433_s16, %s2132_s17 }
  0x6c   : > { %p2129_p11 = pnand %p2127_p8, %p2113_p10  ;;  %p2135_p1 = scmp.lt.s32.totalorder %s2133_s10, %s2126_s9 }
  0x6e   : > { %p2130_p7 = pneg %p2129_p11  ;;  %p2136_p2 = por %p2135_p1, %p2134_p13 }
  0x70   : > { %p2137_p4 = pnand %p2136_p2, %p2130_p7 }
  0x72   : > { %2140 = shalt.err (!%p2137_p4)
}
  0x73   : > { %1904 = dma.hbm_to_vmem [thread:$0]  (!%p2429_p12), %s2427_s13, 512, %s2433_s16, %s2435_s28, %s2220_s23, %s2220_s23, %s2221_s27  }
  0x74   : > { %p2734_p10 = scmp.ne.s32.totalorder %s2728_s26, 0 }
  0x75   : > { %s2469_s29 = sand.u32 (!%p2734_p10), 1, %s2207_s19   ;;  %p2735_p3 = scmp.ne.s32.totalorder (!%p2734_p10), %s2726_s24, 0 }
  0x76   : > { %242 = sbr.rel (%p2734_p10) target bundleno = 3692 (0xe6c), region = 40  ;;  %s1571_s8 = sshll.u32 (!%p2734_p10), %s2469_s29, 5 }
  0x77   : > { %s245_s11 = scalar_lea.sflag (!%p2734_p10), [#allocation7], %s2469_s29  ;;  %s2473_s12 = scalar_lea.vmem (!%p2734_p10), [#allocation6], %s1571_s8 }
  0x7d   : > { %2186 = dma.done.wait (%p2735_p3), %s245_s11, 512  }
  0x7e   : > { %2188 = vsyncadd (%p2735_p3), %s245_s11, 4294966784  ;;  %p2736_p12 = scmp.eq.s32.totalorder %s2284_s22, 0 }
  0x80   : > { %2190 = dma.done.wait (%p2736_p12), [#allocation10], 1024   ;;  %p2737_p9 = pmov %p2736_p12 }
  0x82   : > { %2192 = vsyncadd (%p2737_p9), [#allocation10], 4294966272  ;;  %p2738_p0 = pmov %p2737_p9 }
  0x84   : > { %2194 = dma.done.wait (%p2738_p0), [#allocation13], 512   ;;  %p2739_p6 = pmov %p2738_p0 }
  0x85   : > { %s2487_s26 = scalar_lea.vmem [#allocation14], %s1571_s8  ;;  %p2740_p8 = scmp.ne.s32.totalorder %s2284_s22, 0 }
  0x86   : > { %2196 = vsyncadd (%p2739_p6), [#allocation13], 4294966784  ;;  %vm293_vm0 = vcmask (!%p2740_p8), 261120   ;;  %v2223_v0 = vmov (!%p2740_p8), 0.0  }
  0x87   : > { %292 = sbr.rel (%p2740_p8) target bundleno = 142 (0x8e), region = 60  ;;  %294 = vst.msk [vmem:[#allocation2] sm:$0xff] (!%p2740_p8), %vm293_vm0, %v2223_v0  ;;  %295 = vst.msk [vmem:[#allocation3] sm:$0xff] (!%p2740_p8), %vm293_vm0, %v2223_v0 }
  0x88   : > { %296 = vst.msk [vmem:[#allocation4] sm:$0xff] (!%p2740_p8), %vm293_vm0, %v2223_v0  ;;  %297 = vst.msk [vmem:[#allocation5] sm:$0xff] (!%p2740_p8), %vm293_vm0, %v2223_v0 }
  0x8e PF: > { %v298_v1 = vld [vmem:[#allocation9] sm:$0xff]  ;;  %v299_v2 = vld [vmem:[#allocation9 + $0x8] sm:$0xff]  ;;  %v300_v3 = vld [vmem:[#allocation9 + $0x10] sm:$0xff]  ;;  %v2224_v4 = vmov 0.0|0.0   ;;  %vm2225_vm1 = vmmov 0   ;;  %v2226_v7 = vmov 0.0  }
  0x8f   : > { %1803 = vmatprep.subr.bf16.mxu0 %v2224_v4  ;;  %v2492_v5 = vpack.c.bf16 %v299_v2, %v298_v1  ;;  %v301_v6 = vld [vmem:[#allocation9 + $0x18] sm:$0xff]  ;;  %1679 = vmatprep.mubr.msk.f32.mxu0 %vm2225_vm1, %v2226_v7  ;;  %v311_v9 = vld [vmem:[#allocation2] sm:$0xff]  ;;  %vm316_vm2 = vcmask 261120   ;;  %s2227_s24 = smov 64   ;;  %v312_v15 = vld [vmem:[#allocation3] sm:$0xff]  ;;  %s2228_s23 = smov 32  }
  0x90   : > { %1809 = vmatprep.subr.bf16.mxu1 %v2224_v4  ;;  %1690 = vmatprep.mubr.msk.f32.mxu1 %vm2225_vm1, %v2226_v7  ;;  %v2500_v8 = vpack.c.bf16 %v301_v6, %v300_v3  ;;  %v315_v10 = vld [vmem:[%s2473_s12] sm:$0xff]  ;;  %v307_v27 = vld [vmem:[#allocation12 + $0x8] sm:$0xff]  ;;  %v308_v28 = vld [vmem:[#allocation12 + $0x10] sm:$0xff]  ;;  %s2229_s16 = smov 96   ;;  %s1610_s6 = sshll.u32 %s2284_s22, 9 }
  0x91   : > { %1805 = vmatpush3.bf16.msra.mxu0 %v2492_v5  ;;  %v306_v26 = vld [vmem:[#allocation12] sm:$0xff]  ;;  %v309_v30 = vld [vmem:[#allocation12 + $0x18] sm:$0xff]  ;;  %v303_v32 = vld [vmem:[#allocation11 + $0x8] sm:$0xff]  ;;  %s1459_s28 = sshll.u32 %s2487_s26, 4  ;;  %s2667_s17 = scalar_lea.hbm %s2722_s5, %s1610_s6  ;;  %s2669_s28 = int_to_ptr.vmem [resolvable:$true] %s1459_s28 }
  0x92   : > { %1806 = vmatprep.subr.bf16.mxu0 %v2224_v4  ;;  %v2515_v29 = vpack.c.bf16 %v307_v27, %v306_v26  ;;  %v302_v31 = vld [vmem:[#allocation11] sm:$0xff]  ;;  %v304_v33 = vld [vmem:[#allocation11 + $0x10] sm:$0xff]  ;;  %v305_v34 = vld [vmem:[#allocation11 + $0x18] sm:$0xff]  ;;  %v2518_v35 = vpack.c.bf16 %v309_v30, %v308_v28  ;;  %s1446_s10 = scalar_lea.sflag [#allocation8], %s2469_s29  ;;  %s2141_s8 = scalar_lea.vmem %s2669_s28, 512 }
  0x93   : > { %v2520_v36 = vpack.c.bf16 %v303_v32, %v302_v31  ;;  %v2524_v37 = vpack.c.bf16 %v305_v34, %v304_v33  ;;  %v313_v38 = vld [vmem:[#allocation4] sm:$0xff]  ;;  %v1583_v45 = vld [vmem:[%s2473_s12 + $0x8] sm:$0xff]  ;;  %v2558_v46 = vld [vmem:[%s2721_s4] ss:$0 sm:$0xff]  ;;  %p2142_p11 = scmp.ne.s32.totalorder %s2669_s28, %s2141_s8  ;;  %s2230_s22 = smov [#allocation14]  }
  0x94   : > { %1811 = vmatpush3.bf16.msra.mxu1 %v2515_v29  ;;  %v314_v56 = vld [vmem:[#allocation5] sm:$0xff]  ;;  %v1590_v31 = vld [vmem:[%s2473_s12 + $0x10] sm:$0xff]  ;;  %s2145_s11 = sshll.u32 %s2230_s22, 4  ;;  %s2146_s11 = int_to_ptr.vmem [resolvable:$false] %s2145_s11 }
  0x95   : > { %1808 = vmatpush3.bf16.msra.mxu0 %v2500_v8  ;;  %1812 = vmatprep.subr.bf16.mxu1 %v2224_v4  ;;  %p2143_p7 = pnand %p2142_p11, %p2418_p5  ;;  %p2148_p1 = scmp.lt.s32.totalorder %s2669_s28, %s2146_s11 }
  0x96   : > { %1815 = vmatprep.subr.bf16.mxu0 %v2224_v4 }
  0x97   : > { %p2144_p13 = pneg %p2143_p7 }
  0x98   : > { %1680 = vmatmul.mubr.msk.f32.vlgmr.msra.gmra.mrb[0].mxu0 %vm316_vm2, %v311_v9  ;;  %1814 = vmatpush3.bf16.msra.mxu1 %v2518_v35 }
  0x99   : > { %1701 = vmatprep.mubr.msk.f32.mxu0 %vm2225_vm1, %v2226_v7  ;;  %1817 = vmatpush3.bf16.msra.mxu0 %v2520_v36 }
  0x9a   : > { %1818 = vmatprep.subr.bf16.mxu0 %v2224_v4  ;;  %1821 = vmatprep.subr.bf16.mxu1 %v2224_v4 }
  0x9b   : > { %1691 = vmatmul.mubr.msk.f32.vlgmr.msra.gmra.mrb[0].mxu1 %vm316_vm2, %v313_v38 }
  0x9c   : > { %1823 = vmatpush3.bf16.msra.mxu1 %v2492_v5  ;;  %1712 = vmatprep.mubr.msk.f32.mxu1 %vm2225_vm1, %v2226_v7 }
  0x9d   : > { %1820 = vmatpush3.bf16.msra.mxu0 %v2524_v37  ;;  %1824 = vmatprep.subr.bf16.mxu1 %v2224_v4 }
  0x9e   : > { %1827 = vmatprep.subr.bf16.mxu0 %v2224_v4 }
  0xa0   : > { %1826 = vmatpush3.bf16.msra.mxu1 %v2500_v8 }
  0xa1   : > { %1833 = vmatprep.subr.bf16.mxu1 %v2224_v4 }
 0x16b   : > { %v386_v11 = vpop.f32.mrb[0].mxu0 }
 0x16c   : > { %v390_v12 = vadd.f32 %v386_v11, %v315_v10  ;;  %v1681_v13 = vpop.f32.mrb[1].mxu0 }
 0x16e   : > { %1963 = vtanh.f32 %v390_v12  ;;  %v1578_v16 = vmul.f32 -1.442695, %v390_v12  ;;  %v488_v42 = vpop.f32.mrb[0].mxu1 }
 0x16f   : > { %v1692_v43 = vpop.f32.mrb[1].mxu1 }
 0x170   : > { %1965 = vpow2.f32 %v1578_v16 }
 0x178   : > { %v1964_v14 = vpop.eup %1963 }
 0x179   : > { %404 = vrot.lane.b32.xlu0 %v1964_v14, %s2227_s24 }
 0x17a   : > { %v1966_v17 = vpop.eup %1965 }
 0x17b   : > { %v394_v18 = vadd.f32 1.0, %v1966_v17 }
 0x17d   : > { %399 = vrot.lane.b32.xlu0 %v312_v15, %s2228_s23  ;;  %1967 = vrcp.f32 %v394_v18 }
 0x187   : > { %v1968_v19 = vpop.eup %1967 }
 0x1eb   : > { %v405_v20 = vpop.permute.xlu0 %404 }
 0x1ec   : > { %v407_v21 = vmul.f32 %v1968_v19, %v405_v20 }
 0x1ee   : > { %409 = vrot.lane.b32.xlu1 %v407_v21, %s2228_s23 }
 0x1ef   : > { %v400_v22 = vpop.permute.xlu0 %399 }
 0x1f0   : > { %v402_v23 = vmul.f32 %v1968_v19, %v400_v22 }
 0x260   : > { %v410_v24 = vpop.permute.xlu1 %409 }
 0x261   : > { %v2512_v25 = vadd.f32 %v410_v24, %v402_v23 }
 0x263   : > { %1969 = vtanh.f32 %v2512_v25 }
 0x26d   : > { %v1970_v39 = vpop.eup %1969 }
 0x26e   : > { %415 = vrot.lane.b32.xlu1 %v1970_v39, %s2227_s24 }
 0x2e0   : > { %v416_v40 = vpop.permute.xlu1 %415 }
 0x2e1   : > { %v418_v41 = vmul.f32 %v1968_v19, %v416_v40 }
 0x2e3   : > { %493 = vrot.lane.b32.xlu0 %v418_v41, %s2228_s23 }
 0x355   : > { %v494_v44 = vpop.permute.xlu0 %493 }
 0x356   : > { %1702 = vmatmul.mubr.msk.f32.vlgmr.msra.gmra.mrb[2].mxu0 %vm316_vm2, %v494_v44  ;;  %1713 = vmatmul.mubr.msk.f32.vlgmr.msra.gmra.mrb[2].mxu1 %vm316_vm2, %v494_v44 }
 0x357   : > { %1835 = vmatpush3.bf16.msra.mxu1 %v2520_v36  ;;  %1829 = vmatpush3.bf16.msra.mxu0 %v2515_v29 }
 0x358   : > { %1836 = vmatprep.subr.bf16.mxu1 %v2224_v4  ;;  %1830 = vmatprep.subr.bf16.mxu0 %v2224_v4 }
 0x359   : > { %1734 = vmatprep.mubr.msk.f32.mxu1 %vm2225_vm1, %v2226_v7  ;;  %1723 = vmatprep.mubr.msk.f32.mxu0 %vm2225_vm1, %v2226_v7 }
 0x35b   : > { %1838 = vmatpush3.bf16.msra.mxu1 %v2524_v37  ;;  %1832 = vmatpush3.bf16.msra.mxu0 %v2518_v35 }
 0x35c   : > { %1839 = vmatprep.subr.bf16.mxu0 %v2224_v4  ;;  %1845 = vmatprep.subr.bf16.mxu1 %v2224_v4 }
 0x429   : > { %v563_v47 = vpop.f32.mrb[2].mxu0  ;;  %v675_v48 = vpop.f32.mrb[2].mxu1 }
 0x42a   : > { %v564_v49 = vadd.f32 %v563_v47, %v488_v42  ;;  %v679_v50 = vadd.f32 %v1583_v45, %v675_v48  ;;  %v1703_v51 = vpop.f32.mrb[3].mxu0  ;;  %v1714_v52 = vpop.f32.mrb[3].mxu1 }
 0x42c   : > { %v573_v53 = vadd.f32 %v2558_v46, %v564_v49  ;;  %1971 = vtanh.f32 %v679_v50  ;;  %v1585_v57 = vmul.f32 -1.442695, %v679_v50 }
 0x42e   : > { %1973 = vtanh.f32 %v573_v53  ;;  %v1582_v58 = vmul.f32 -1.442695, %v573_v53 }
 0x42f   : > { %1975 = vpow2.f32 %v1585_v57 }
 0x430   : > { %1977 = vpow2.f32 %v1582_v58 }
 0x436   : > { %v1972_v54 = vpop.eup %1971 }
 0x437   : > { %689 = vrot.lane.b32.xlu0 %v1972_v54, %s2227_s24 }
 0x438   : > { %v1974_v55 = vpop.eup %1973 }
 0x439   : > { %587 = vrot.lane.b32.xlu1 %v1974_v55, %s2227_s24  ;;  %v1976_v59 = vpop.eup %1975 }
 0x43a   : > { %v1978_v60 = vpop.eup %1977  ;;  %v683_v61 = vadd.f32 1.0, %v1976_v59 }
 0x43b   : > { %v577_v62 = vadd.f32 1.0, %v1978_v60 }
 0x43c   : > { %1979 = vrcp.f32 %v683_v61 }
 0x43d   : > { %582 = vrot.lane.b32.xlu1 %v314_v56, %s2228_s23  ;;  %1981 = vrcp.f32 %v577_v62 }
 0x446   : > { %v1980_v63 = vpop.eup %1979 }
 0x447   : > { %v1982_v2 = vpop.eup %1981  ;;  %v687_v10 = vmul.f32 %v1980_v63, %v2512_v25 }
 0x4a9   : > { %v690_v0 = vpop.permute.xlu0 %689 }
 0x4aa   : > { %v692_v1 = vmul.f32 %v1980_v63, %v690_v0 }
 0x4ab   : > { %v588_v3 = vpop.permute.xlu1 %587 }
 0x4ac   : > { %v590_v6 = vmul.f32 %v1982_v2, %v588_v3  ;;  %694 = vrot.lane.b32.xlu1 %v692_v1, %s2228_s23  ;;  %v1597_v3 = vld [vmem:[%s2473_s12 + $0x18] sm:$0xff]  ;;  %s2147_s12 = scalar_lea.vmem %s2146_s11, 1024 }
 0x4ad   : > { %p2149_p2 = scmp.lt.s32.totalorder %s2147_s12, %s2141_s8 }
 0x4ae   : > { %592 = vrot.lane.b32.xlu0 %v590_v6, %s2228_s23 }
 0x4af   : > { %v583_v9 = vpop.permute.xlu1 %582  ;;  %p2150_p4 = por %p2149_p2, %p2148_p1 }
 0x4b0   : > { %v585_v12 = vmul.f32 %v1982_v2, %v583_v9 }
 0x4b1   : > { %p2151_p10 = pnand %p2150_p4, %p2144_p13 }
 0x51e   : > { %v695_v11 = vpop.permute.xlu1 %694 }
 0x51f   : > { %v2567_v13 = vadd.f32 %v695_v11, %v687_v10 }
 0x520   : > { %v593_v14 = vpop.permute.xlu0 %592 }
 0x521   : > { %1983 = vtanh.f32 %v2567_v13  ;;  %v2570_v15 = vadd.f32 %v593_v14, %v585_v12 }
 0x523   : > { %1985 = vtanh.f32 %v2570_v15 }
 0x52b   : > { %v1984_v16 = vpop.eup %1983 }
 0x52c   : > { %700 = vrot.lane.b32.xlu1 %v1984_v16, %s2227_s24 }
 0x52d   : > { %v1986_v17 = vpop.eup %1985 }
 0x52e   : > { %598 = vrot.lane.b32.xlu0 %v1986_v17, %s2227_s24 }
 0x59e   : > { %v701_v18 = vpop.permute.xlu1 %700 }
 0x59f   : > { %v703_v19 = vmul.f32 %v1980_v63, %v701_v18 }
 0x5a0   : > { %v599_v20 = vpop.permute.xlu0 %598 }
 0x5a1   : > { %v601_v21 = vmul.f32 %v1982_v2, %v599_v20  ;;  %777 = vrot.lane.b32.xlu1 %v703_v19, %s2228_s23 }
 0x5a3   : > { %603 = vrot.lane.b32.xlu0 %v601_v21, %s2228_s23 }
 0x613   : > { %v778_v22 = vpop.permute.xlu1 %777 }
 0x614   : > { %1735 = vmatmul.mubr.msk.f32.vlgmr.msra.gmra.mrb[4].mxu1 %vm316_vm2, %v778_v22 }
 0x615   : > { %v604_v23 = vpop.permute.xlu0 %603  ;;  %1847 = vmatpush3.bf16.msra.mxu1 %v2515_v29  ;;  %1756 = vmatprep.mubr.msk.f32.mxu1 %vm2225_vm1, %v2226_v7 }
 0x616   : > { %606 = vst.msk [vmem:[%s2487_s26] sm:$0xff] %vm316_vm2, %v604_v23  ;;  %1724 = vmatmul.mubr.msk.f32.vlgmr.msra.gmra.mrb[4].mxu0 %vm316_vm2, %v604_v23  ;;  %1848 = vmatprep.subr.bf16.mxu1 %v2224_v4 }
 0x617   : > { %1841 = vmatpush3.bf16.msra.mxu0 %v2492_v5  ;;  %1745 = vmatprep.mubr.msk.f32.mxu0 %vm2225_vm1, %v2226_v7 }
 0x618   : > { %1842 = vmatprep.subr.bf16.mxu0 %v2224_v4 }
 0x619   : > { %1850 = vmatpush3.bf16.msra.mxu1 %v2518_v35 }
 0x61a   : > { %1857 = vmatprep.subr.bf16.mxu1 %v2224_v4 }
 0x61b   : > { %1844 = vmatpush3.bf16.msra.mxu0 %v2500_v8 }
 0x61c   : > { %1851 = vmatprep.subr.bf16.mxu0 %v2224_v4 }
 0x61e   : > { %1746 = vmatmul.mubr.msk.f32.vlgmr.msra.gmra.mrb[6].mxu0 %vm316_vm2, %v778_v22 }
 0x61f   : > { %1853 = vmatpush3.bf16.msra.mxu0 %v2520_v36  ;;  %1767 = vmatprep.mubr.msk.f32.mxu0 %vm2225_vm1, %v2226_v7 }
 0x620   : > { %1854 = vmatprep.subr.bf16.mxu0 %v2224_v4 }
 0x623   : > { %1856 = vmatpush3.bf16.msra.mxu0 %v2524_v37 }
 0x624   : > { %1863 = vmatprep.subr.bf16.mxu0 %v2224_v4 }
 0x6e7   : > { %v847_v24 = vpop.f32.mrb[4].mxu1 }
 0x6e8   : > { %v1736_v25 = vpop.f32.mrb[5].mxu1 }
 0x6e9   : > { %v772_v26 = vpop.f32.mrb[4].mxu0 }
 0x6ea   : > { %v848_v27 = vadd.f32 %v847_v24, %v772_v26  ;;  %v1725_v28 = vpop.f32.mrb[5].mxu0 }
 0x6ec   : > { %v851_v30 = vadd.f32 %v2558_v46, %v848_v27 }
 0x6ee   : > { %1987 = vtanh.f32 %v851_v30  ;;  %v1588_v40 = vmul.f32 -1.442695, %v851_v30 }
 0x6f1   : > { %v950_v32 = vpop.f32.mrb[6].mxu0 }
 0x6f2   : > { %v954_v33 = vadd.f32 %v1590_v31, %v950_v32  ;;  %v1747_v34 = vpop.f32.mrb[7].mxu0 }
 0x6f4   : > { %1989 = vtanh.f32 %v954_v33  ;;  %v1592_v41 = vmul.f32 -1.442695, %v954_v33 }
 0x6f5   : > { %1991 = vpow2.f32 %v1588_v40 }
 0x6f6   : > { %1993 = vpow2.f32 %v1592_v41 }
 0x6f8   : > { %v1988_v38 = vpop.eup %1987 }
 0x6f9   : > { %861 = vrot.lane.b32.xlu0 %v1988_v38, %s2227_s24 }
 0x6fe   : > { %v1990_v39 = vpop.eup %1989 }
 0x6ff   : > { %964 = vrot.lane.b32.xlu1 %v1990_v39, %s2227_s24  ;;  %v1992_v42 = vpop.eup %1991 }
 0x700   : > { %v855_v43 = vadd.f32 1.0, %v1992_v42  ;;  %v1994_v44 = vpop.eup %1993 }
 0x701   : > { %v958_v45 = vadd.f32 1.0, %v1994_v44 }
 0x702   : > { %1995 = vrcp.f32 %v855_v43 }
 0x703   : > { %1997 = vrcp.f32 %v958_v45 }
 0x70c   : > { %v1996_v47 = vpop.eup %1995 }
 0x70d   : > { %v1998_v50 = vpop.eup %1997  ;;  %v859_v53 = vmul.f32 %v1996_v47, %v2570_v15 }
 0x70e   : > { %v962_v56 = vmul.f32 %v1998_v50, %v2567_v13 }
 0x76b   : > { %v862_v48 = vpop.permute.xlu0 %861 }
 0x76c   : > { %v864_v49 = vmul.f32 %v1996_v47, %v862_v48 }
 0x76e   : > { %866 = vrot.lane.b32.xlu0 %v864_v49, %s2228_s23 }
 0x771   : > { %v965_v51 = vpop.permute.xlu1 %964 }
 0x772   : > { %v967_v52 = vmul.f32 %v1998_v50, %v965_v51 }
 0x774   : > { %969 = vrot.lane.b32.xlu1 %v967_v52, %s2228_s23 }
 0x7e0   : > { %v867_v54 = vpop.permute.xlu0 %866 }
 0x7e1   : > { %v2607_v55 = vadd.f32 %v867_v54, %v859_v53 }
 0x7e3   : > { %1999 = vtanh.f32 %v2607_v55 }
 0x7e6   : > { %v970_v57 = vpop.permute.xlu1 %969 }
 0x7e7   : > { %v2611_v58 = vadd.f32 %v970_v57, %v962_v56 }
 0x7e9   : > { %2001 = vtanh.f32 %v2611_v58 }
 0x7ed   : > { %v2000_v59 = vpop.eup %1999 }
 0x7ee   : > { %872 = vrot.lane.b32.xlu0 %v2000_v59, %s2227_s24 }
 0x7f3   : > { %v2002_v60 = vpop.eup %2001 }
 0x7f4   : > { %975 = vrot.lane.b32.xlu1 %v2002_v60, %s2227_s24 }
 0x860   : > { %v873_v61 = vpop.permute.xlu0 %872 }
 0x861   : > { %v875_v62 = vmul.f32 %v1996_v47, %v873_v61 }
 0x863   : > { %877 = vrot.lane.b32.xlu0 %v875_v62, %s2228_s23 }
 0x866   : > { %v976_v63 = vpop.permute.xlu1 %975 }
 0x867   : > { %v978_v0 = vmul.f32 %v1998_v50, %v976_v63 }
 0x869   : > { %1052 = vrot.lane.b32.xlu1 %v978_v0, %s2228_s23 }
 0x8d5   : > { %v878_v1 = vpop.permute.xlu0 %877 }
 0x8d6   : > { %1589 = vst.msk [vmem:[%s2487_s26 + $0x8] sm:$0xff] %vm316_vm2, %v878_v1  ;;  %1757 = vmatmul.mubr.msk.f32.vlgmr.msra.gmra.mrb[6].mxu1 %vm316_vm2, %v878_v1 }
 0x8d7   : > { %1859 = vmatpush3.bf16.msra.mxu1 %v2492_v5  ;;  %1778 = vmatprep.mubr.msk.f32.mxu1 %vm2225_vm1, %v2226_v7 }
 0x8d8   : > { %1860 = vmatprep.subr.bf16.mxu1 %v2224_v4 }
 0x8db   : > { %1862 = vmatpush3.bf16.msra.mxu1 %v2500_v8  ;;  %v1053_v2 = vpop.permute.xlu1 %1052 }
 0x8dc   : > { %1768 = vmatmul.mubr.msk.f32.vlgmr.msra.gmra.mrb[8].mxu0 %vm316_vm2, %v1053_v2  ;;  %1869 = vmatprep.subr.bf16.mxu1 %v2224_v4 }
 0x8dd   : > { %1865 = vmatpush3.bf16.msra.mxu0 %v2515_v29  ;;  %1789 = vmatprep.mubr.msk.f32.mxu0 %vm2225_vm1, %v2226_v7 }
 0x8de   : > { %1779 = vmatmul.mubr.msk.f32.vlgmr.msra.gmra.mrb[8].mxu1 %vm316_vm2, %v1053_v2  ;;  %1866 = vmatprep.subr.bf16.mxu0 %v2224_v4 }
 0x8df   : > { %1871 = vmatpush3.bf16.msra.mxu1 %v2520_v36  ;;  %1800 = vmatprep.mubr.msk.f32.mxu1 %vm2225_vm1, %v2226_v7 }
 0x8e0   : > { %1872 = vmatprep.subr.bf16.mxu1 %v2224_v4 }
 0x8e1   : > { %1868 = vmatpush3.bf16.msra.mxu0 %v2518_v35 }
 0x8e3   : > { %1874 = vmatpush3.bf16.msra.mxu1 %v2524_v37 }
 0x9a9   : > { %v1047_v5 = vpop.f32.mrb[6].mxu1 }
 0x9aa   : > { %v1758_v8 = vpop.f32.mrb[7].mxu1 }
 0x9af   : > { %v1122_v29 = vpop.f32.mrb[8].mxu0 }
 0x9b0   : > { %v1123_v6 = vadd.f32 %v1122_v29, %v1047_v5  ;;  %v1769_v9 = vpop.f32.mrb[9].mxu0 }
 0x9b1   : > { %v1225_v10 = vpop.f32.mrb[8].mxu1 }
 0x9b2   : > { %v1126_v11 = vadd.f32 %v2558_v46, %v1123_v6  ;;  %v1229_v12 = vadd.f32 %v1597_v3, %v1225_v10  ;;  %v1780_v36 = vpop.f32.mrb[9].mxu1 }
 0x9b4   : > { %2003 = vtanh.f32 %v1126_v11  ;;  %v1595_v4 = vmul.f32 -1.442695, %v1126_v11  ;;  %v1599_v35 = vmul.f32 -1.442695, %v1229_v12 }
 0x9b5   : > { %2005 = vtanh.f32 %v1229_v12 }
 0x9b6   : > { %2007 = vpow2.f32 %v1595_v4 }
 0x9b7   : > { %2009 = vpow2.f32 %v1599_v35 }
 0x9be   : > { %v2004_v7 = vpop.eup %2003 }
 0x9bf   : > { %v2006_v13 = vpop.eup %2005  ;;  %1136 = vrot.lane.b32.xlu0 %v2004_v7, %s2227_s24 }
 0x9c0   : > { %1239 = vrot.lane.b32.xlu1 %v2006_v13, %s2227_s24  ;;  %v2008_v37 = vpop.eup %2007 }
 0x9c1   : > { %v2010_v14 = vpop.eup %2009  ;;  %v1130_v15 = vadd.f32 1.0, %v2008_v37 }
 0x9c2   : > { %v1233_v16 = vadd.f32 1.0, %v2010_v14 }
 0x9c3   : > { %2011 = vrcp.f32 %v1130_v15 }
 0x9c4   : > { %2013 = vrcp.f32 %v1233_v16 }
 0x9cd   : > { %v2012_v17 = vpop.eup %2011 }
 0x9ce   : > { %v2014_v19 = vpop.eup %2013  ;;  %v1134_v23 = vmul.f32 %v2012_v17, %v2607_v55 }
 0x9cf   : > { %v1237_v24 = vmul.f32 %v2014_v19, %v2611_v58 }
 0xa31   : > { %v1137_v18 = vpop.permute.xlu0 %1136 }
 0xa32   : > { %v1240_v20 = vpop.permute.xlu1 %1239  ;;  %v1139_v21 = vmul.f32 %v2012_v17, %v1137_v18 }
 0xa33   : > { %v1242_v22 = vmul.f32 %v2014_v19, %v1240_v20 }
 0xa34   : > { %1141 = vrot.lane.b32.xlu0 %v1139_v21, %s2228_s23 }
 0xa35   : > { %1244 = vrot.lane.b32.xlu1 %v1242_v22, %s2228_s23 }
 0xaa6   : > { %v1142_v25 = vpop.permute.xlu0 %1141 }
 0xaa7   : > { %v1245_v26 = vpop.permute.xlu1 %1244  ;;  %v1144_v27 = vadd.f32 %v1142_v25, %v1134_v23 }
 0xaa8   : > { %v1247_v28 = vadd.f32 %v1245_v26, %v1237_v24 }
 0xaa9   : > { %2015 = vtanh.f32 %v1144_v27 }
 0xaaa   : > { %2017 = vtanh.f32 %v1247_v28 }
 0xab3   : > { %v2016_v30 = vpop.eup %2015 }
 0xab4   : > { %v2018_v31 = vpop.eup %2017  ;;  %1147 = vrot.lane.b32.xlu0 %v2016_v30, %s2227_s24 }
 0xab5   : > { %1250 = vrot.lane.b32.xlu1 %v2018_v31, %s2227_s24 }
 0xb26   : > { %v1148_v32 = vpop.permute.xlu0 %1147 }
 0xb27   : > { %v1251_v33 = vpop.permute.xlu1 %1250  ;;  %v1150_v34 = vmul.f32 %v2012_v17, %v1148_v32 }
 0xb28   : > { %v1253_v38 = vmul.f32 %v2014_v19, %v1251_v33 }
 0xb29   : > { %1152 = vrot.lane.b32.xlu0 %v1150_v34, %s2228_s23 }
 0xb2a   : > { %1327 = vrot.lane.b32.xlu1 %v1253_v38, %s2228_s23 }
 0xb9b   : > { %v1153_v39 = vpop.permute.xlu0 %1152 }
 0xb9c   : > { %v1328_v40 = vpop.permute.xlu1 %1327  ;;  %1596 = vst.msk [vmem:[%s2487_s26 + $0x10] sm:$0xff] %vm316_vm2, %v1153_v39  ;;  %1790 = vmatmul.mubr.msk.f32.vlgmr.msra.gmra.mrb[10].mxu0 %vm316_vm2, %v1153_v39 }
 0xb9d   : > { %1433 = vst.msk [vmem:[#allocation2] sm:$0xff] %vm316_vm2, %v1328_v40  ;;  %1801 = vmatmul.mubr.msk.f32.vlgmr.msra.gmra.mrb[10].mxu1 %vm316_vm2, %v1328_v40 }
 0xc6f   : > { %v1322_v41 = vpop.f32.mrb[10].mxu0 }
 0xc70   : > { %v1397_v42 = vpop.f32.mrb[10].mxu1  ;;  %v1791_v43 = vpop.f32.mrb[11].mxu0 }
 0xc71   : > { %v1398_v44 = vadd.f32 %v1397_v42, %v1322_v41  ;;  %v1802_v45 = vpop.f32.mrb[11].mxu1 }
 0xc73   : > { %v1401_v47 = vadd.f32 %v2558_v46, %v1398_v44 }
 0xc75   : > { %2019 = vtanh.f32 %v1401_v47  ;;  %v1602_v49 = vmul.f32 -1.442695, %v1401_v47 }
 0xc77   : > { %2021 = vpow2.f32 %v1602_v49 }
 0xc7f   : > { %v2020_v48 = vpop.eup %2019 }
 0xc80   : > { %1411 = vrot.lane.b32.xlu0 %v2020_v48, %s2227_s24 }
 0xc81   : > { %v2022_v50 = vpop.eup %2021 }
 0xc82   : > { %v1405_v51 = vadd.f32 1.0, %v2022_v50 }
 0xc84   : > { %2023 = vrcp.f32 %v1405_v51 }
 0xc8e   : > { %v2024_v52 = vpop.eup %2023 }
 0xc8f   : > { %v1409_v55 = vmul.f32 %v2024_v52, %v1144_v27 }
 0xcf2   : > { %v1412_v53 = vpop.permute.xlu0 %1411 }
 0xcf3   : > { %v1414_v54 = vmul.f32 %v2024_v52, %v1412_v53 }
 0xcf5   : > { %1416 = vrot.lane.b32.xlu1 %v1414_v54, %s2228_s23 }
 0xd67   : > { %v1417_v56 = vpop.permute.xlu1 %1416 }
 0xd68   : > { %v1419_v57 = vadd.f32 %v1417_v56, %v1409_v55 }
 0xd6a   : > { %2025 = vtanh.f32 %v1419_v57 }
 0xd74   : > { %v2026_v46 = vpop.eup %2025 }
 0xd75   : > { %1422 = vrot.lane.b32.xlu0 %v2026_v46, %s2227_s24 }
 0xd79   : > { %1435 = vrot.lane.b32.xlu0 %v1247_v28, %s2229_s16 }
 0xde7   : > { %v1423_v58 = vpop.permute.xlu0 %1422 }
 0xde8   : > { %v1425_v59 = vmul.f32 %v2024_v52, %v1423_v58 }
 0xdea   : > { %1427 = vrot.lane.b32.xlu1 %v1425_v59, %s2228_s23 }
 0xdeb   : > { %v1436_v60 = vpop.permute.xlu0 %1435 }
 0xdec   : > { %1438 = vst.msk [vmem:[#allocation3] sm:$0xff] %vm316_vm2, %v1436_v60 }
 0xdee   : > { %1441 = vrot.lane.b32.xlu1 %v1419_v57, %s2229_s16 }
 0xe5c   : > { %v1428_v61 = vpop.permute.xlu1 %1427 }
 0xe5d   : > { %1603 = vst.msk [vmem:[%s2487_s26 + $0x18] sm:$0xff] %vm316_vm2, %v1428_v61  ;;  %1439 = vst.msk [vmem:[#allocation4] sm:$0xff] %vm316_vm2, %v1428_v61 }
 0xe5e   : > { %2154 = shalt.err (!%p2151_p10)
}
 0xe5f   : > { %s2155_s26 = scalar_lea.hbm %s2667_s17, 512  ;;  %s2159_s27 = scalar_lea.hbm %s2722_s5, 1024 }
 0xe60   : > { %p2156_p3 = scmp.ne.s32.totalorder %s2667_s17, %s2155_s26  ;;  %p2160_p0 = scmp.lt.u32.totalorder %s2667_s17, %s2722_s5 }
 0xe61   : > { %p2161_p6 = scmp.lt.u32.totalorder %s2159_s27, %s2155_s26  ;;  %p2163_p11 = scmp.lt.u32.totalorder %s2155_s26, %s2667_s17 }
 0xe62   : > { %p2157_p12 = pnand %p2156_p3, %p2418_p5 }
 0xe63   : > { %p2162_p8 = por %p2161_p6, %p2160_p0 }
 0xe64   : > { %p2158_p9 = pneg %p2157_p12 }
 0xe65   : > { %p2164_p7 = por %p2163_p11, %p2162_p8 }
 0xe67   : > { %p2165_p13 = pnand %p2164_p7, %p2158_p9 }
 0xe69   : > { %2168 = shalt.err (!%p2165_p13)
}
 0xe6a   : > { %s2231_s6 = smov 128   ;;  %s2232_s9 = smov 8   ;;  %v1442_v62 = vpop.permute.xlu1 %1441 }
 0xe6b   : > { %1889 = dma.vmem_to_hbm [thread:$0]  (%p2418_p5), %s2669_s28, 512, %s2667_s17, %s1446_s10, %s2231_s6, %s2231_s6, %s2232_s9   ;;  %1444 = vst.msk [vmem:[#allocation5] sm:$0xff] %vm316_vm2, %v1442_v62 }
 0xe6c PF: > { %s1474_s15 = sand.u32 1, %s2203_s18   ;;  %p2741_p1 = scmp.ne.s32.totalorder %s2727_s25, 0 }
 0xe6d   : > { %p2742_p2 = scmp.ge.s32.totalorder %s2215_s21, 2  ;;  %s1475_s8 = scalar_lea.sflag [#allocation8], %s1474_s15 }
 0xe6f   : > { %p1906_p4 = pnand %p2742_p2, %p2741_p1 }
 0xe71   : > { %2198 = dma.done.wait (!%p1906_p4), %s1475_s8, 512  }
 0xe72   : > { %2200 = vsyncadd (!%p1906_p4), %s1475_s8, 4294966784  ;;  %p20_p5 = scmp.ge.s32.totalorder %s2404_s14, 4   ;;  %s2743_s18 = smov %s2207_s19 }
 0xe73   : > { %s2744_s19 = smov %s2211_s20  ;;  %s2745_s20 = smov %s2414_s30 }
 0xe74   : > { %s2746_s21 = smov %s2404_s14  ;;  %22 = sbr.rel (!%p20_p5) target bundleno = 7 (0x7), region = 107 }
 0xe7b   :  { %1480 = vsyncpa [#allocation7], 1 }
 0xe7c   :  { %1482 = vsyncpa [#allocation7 + $0x1], 1 }
 0xe7d   :  { %1483 = vsyncpa [#allocation10], 1 }
 0xe7e   :  { %1484 = vsyncpa [#allocation13], 1 }
 0xe7f   :  { %1485 = vsyncpa [#allocation8], 1 }
 0xe80   :  { %1487 = vsyncpa [#allocation8 + $0x1], 1 }

</bundles_post_ra>
